<compile_context>
chip_gen: v6e
topology: v6e:2x2x1
jax: 0.10.0
libtpu: 0.0.40
codegen_flags: <defaults>
</compile_context>

<pallas_src>
import functools

import jax
import jax.numpy as jnp
from jax import lax
from jax.experimental import pallas as pl
from jax.experimental.pallas import tpu as pltpu


# ---------------------------------------------------------------------------
# Pallas kernel: full stack for ONE (batch, time-window) grid cell
# ---------------------------------------------------------------------------
def refine_kernel(num_layers, chunk_t, halo, seq_len,
                  x_hbm_ref,   # (N, dim, 2*halo + T_pad)  f32, stays in HBM (pl.ANY)
                  w_in_ref,    # (F, dim)        matmul dtype
                  b_in_ref,    # (F, 1)          f32
                  wd_ref,      # (L, F, 3F)      fused dilated-conv taps, matmul dtype
                  bd_ref,      # (L, F, 1)       f32
                  w1_ref,      # (L, F, F)       matmul dtype
                  b1_ref,      # (L, F, 1)       f32
                  w_out_ref,   # (C_out, F)      matmul dtype
                  b_out_ref,   # (C_out, 1)      f32
                  out_ref,     # (1, C_out, chunk_t)
                  x_vmem,      # (dim, W) f32 scratch        W = chunk_t + 2*halo
                  x3_vmem,     # (3F, W) matmul-dtype scratch (fused 3-tap operand)
                  dma_sem):    # DMA completion semaphore
    mm_dtype = w_in_ref.dtype
    F = w_in_ref.shape[0]
    W = chunk_t + 2 * halo
    b = pl.program_id(0)
    i = pl.program_id(1)

    # Pull this (batch, time-window) slab straight from HBM — no host-side
    # overlapping-window gather.  Compute per window >> DMA time at these channel
    # widths, so a single blocking copy per step is fine (no double-buffer needed).
    start = pl.multiple_of(i * chunk_t, 128)
    cp = pltpu.make_async_copy(x_hbm_ref.at[b, :, pl.ds(start, W)], x_vmem, dma_sem)
    cp.start()
    cp.wait()

    # Global time index of every lane in this window.  Columns outside [0, seq_len)
    # are forced to zero after every layer, reproducing Conv1d(padding=dilation)'s
    # zero padding at the sequence boundaries; interior tiles see real neighbor
    # data through the halo.
    g = lax.broadcasted_iota(jnp.int32, (1, W), 1) + i * chunk_t - halo
    valid = (g >= 0) & (g < seq_len)

    # conv_1x1 (input projection): pointwise conv == channel matmul.
    feat = jnp.dot(w_in_ref[...], x_vmem[...].astype(mm_dtype),
                   preferred_element_type=jnp.float32) + b_in_ref[...]
    feat = jnp.where(valid, feat, 0.0)            # f32 residual stream

    # DilatedResidualLayer stack (unrolled; num_layers is static).
    for l in range(num_layers):
        d = 2 ** l
        # feat[t - d] / feat[t + d] via XLU lane rotations.  Wrapped-in lanes only
        # ever land in the discarded halo / masked tail (wrapper asserts this).
        # The cast to the matmul dtype is fused into the slab stores so the fused
        # (3F, W) operand is built once per layer in a reused VMEM scratch.
        x3_vmem[0:F, :] = pltpu.roll(feat, shift=d, axis=1).astype(mm_dtype)      # t-d
        x3_vmem[F:2 * F, :] = feat.astype(mm_dtype)                               # t
        x3_vmem[2 * F:3 * F, :] = pltpu.roll(feat, shift=W - d, axis=1).astype(mm_dtype)  # t+d

        # Fused 3-tap dilated conv: one (F,3F) x (3F,W) matmul.
        conv = jnp.dot(wd_ref[l], x3_vmem[...],
                       preferred_element_type=jnp.float32) + bd_ref[l]
        h = jnp.maximum(conv, 0.0)                                     # ReLU (f32)
        h = jnp.dot(w1_ref[l], h.astype(mm_dtype),
                    preferred_element_type=jnp.float32) + b1_ref[l]    # conv_1x1
        # TODO(synk): Dropout(p=0.55) is identity in eval mode; training-mode masking omitted.
        feat = jnp.where(valid, feat + h, 0.0)                         # residual

    # conv_out on the tile interior only (halo lanes are never computed/stored here).
    feat_i = feat[:, halo:halo + chunk_t]        # lane-aligned: halo is 0 or 128k
    out = jnp.dot(w_out_ref[...], feat_i.astype(mm_dtype),
                  preferred_element_type=jnp.float32) + b_out_ref[...]
    out_ref[0] = out.astype(out_ref.dtype)


# ---------------------------------------------------------------------------
# Wrapper: host-side layout, whole-sequence / halo-tiled policy, pallas_call
# ---------------------------------------------------------------------------
def refine_action(x, params, num_layers, *, chunk_t=None, matmul_dtype=jnp.float32):
    N, dim, T = x.shape
    F_ = params["w_in"].shape[0]
    C_out = params["w_out"].shape[0]
    L = num_layers
    max_d = 2 ** (L - 1)
    rf = 2 ** L - 1                               # receptive-field radius of the stack

    mm = matmul_dtype
    mm_bytes = jnp.dtype(mm).itemsize

    # Generation-aware VMEM budget (~40% of physical per-core VMEM: ~25 MiB on v7x
    # which has 64 MiB/TC, ~48-51 MiB on v5e/v6e which have 128 MiB).
    try:
        vmem_cap = int(pltpu.get_tpu_info().vmem_capacity_bytes)
    except Exception:
        vmem_cap = 128 * 1024 * 1024
    vmem_budget = max(16 * 1024 * 1024, int(0.40 * vmem_cap))

    weight_bytes = int((F_ * dim + L * F_ * 3 * F_ + L * F_ * F_ + C_out * F_) * mm_bytes
                       + (F_ + 2 * L * F_ + C_out) * 4)

    # Rough live bytes per time column inside the layer body (f32 residual / conv /
    # ReLU temporaries + mm-dtype 3-tap operand and casts).  Over-estimated for safety.
    col_bytes = 4 * dim + 4 * 6 * F_ + mm_bytes * 5 * F_
    act_budget = max(1 << 20, vmem_budget - 3 * weight_bytes - 8 * C_out * 1024)
    max_w = max(256, (act_budget // col_bytes) // 128 * 128)

    if chunk_t is None:
        # Preferred structure: whole padded sequence per batch in VMEM -> no halo,
        # no redundant compute.  The +max_d slack keeps pltpu.roll wrap-around in
        # the zero / masked tail instead of real interior lanes.
        whole_w = ((T + max_d + 127) // 128) * 128
        if whole_w <= max_w and N >= 2:
            halo, chunk_t, num_chunks = 0, whole_w, 1
        else:
            # Fallback: halo-tiled time axis (very long sequences, or N == 1 so that
            # v7x's two TensorCores still get >= 2 parallel grid steps).
            halo = ((rf + 127) // 128) * 128      # lane-aligned interior slice
            cap = max(128, ((max_w - 2 * halo) // 128) * 128)
            chunk_t = min(cap, ((T + 127) // 128) * 128)
            num_chunks = pl.cdiv(T, chunk_t)
            if num_chunks == 1 and N < 2:
                chunk_t = max(128, ((T + 255) // 256) * 128)   # ~2 time chunks
                num_chunks = pl.cdiv(T, chunk_t)
    else:
        chunk_t = max(128, ((chunk_t + 127) // 128) * 128)
        num_chunks = pl.cdiv(T, chunk_t)
        if num_chunks == 1 and chunk_t >= T + max_d:
            halo = 0
        else:
            halo = ((rf + 127) // 128) * 128

    # Correctness invariants: roll wrap-around must never reach interior lanes.
    if halo == 0:
        assert num_chunks == 1 and chunk_t >= T + max_d, (num_chunks, chunk_t, T, max_d)
    else:
        assert halo >= rf, (halo, rf)

    T_pad = num_chunks * chunk_t
    W = chunk_t + 2 * halo

    # Zero-pad the time axis once (no overlapping-window gather, no transposes):
    # the kernel DMAs its own halo'd window straight out of this HBM array.
    x_padded = jnp.pad(x.astype(jnp.float32),
                       ((0, 0), (0, 0), (halo, halo + T_pad - T)))

    # Host-side weight layout: fuse the 3 dilated taps -> (L, F, 3F); matmul
    # operands in matmul_dtype, biases in f32.
    wd_fused = jnp.transpose(params["wd"], (0, 2, 1, 3)).reshape(L, F_, 3 * F_).astype(mm)
    w_in = params["w_in"].astype(mm)
    w1 = params["w1"].astype(mm)
    w_out = params["w_out"].astype(mm)
    b_in = params["b_in"].astype(jnp.float32)
    bd = params["bd"].astype(jnp.float32)
    b1 = params["b1"].astype(jnp.float32)
    b_out = params["b_out"].astype(jnp.float32)

    def full_spec(arr):
        nd = arr.ndim
        return pl.BlockSpec(arr.shape, lambda b, i, _nd=nd: (0,) * _nd)

    kernel = functools.partial(refine_kernel, num_layers, chunk_t, halo, T)

    # Advisory cost estimate for the XLA scheduler.
    flops = int(2 * N * num_chunks *
                (W * (F_ * dim + L * (3 * F_ * F_ + F_ * F_)) + chunk_t * C_out * F_))
    bytes_accessed = int(N * num_chunks * dim * W * 4 + N * T_pad * C_out * 4 + weight_bytes)

    # VMEM working-set estimate for this tiling (scratches + f32 temporaries +
    # mm-dtype casts + resident weights + double-buffered output block).
    est = (dim * W * 4
           + 3 * F_ * W * mm_bytes
           + 6 * F_ * W * 4
           + 2 * F_ * W * mm_bytes
           + 2 * weight_bytes
           + 2 * C_out * chunk_t * 4)
    vmem_limit = int(min(vmem_budget, max(16 * 1024 * 1024, 4 * est)))

    out = pl.pallas_call(
        kernel,
        out_shape=jax.ShapeDtypeStruct((N, C_out, T_pad), jnp.float32),
        grid_spec=pltpu.PrefetchScalarGridSpec(
            num_scalar_prefetch=0,
            grid=(N, num_chunks),
            in_specs=[
                pl.BlockSpec(memory_space=pl.ANY),   # x stays in HBM; kernel DMAs windows
                full_spec(w_in),
                full_spec(b_in),
                full_spec(wd_fused),
                full_spec(bd),
                full_spec(w1),
                full_spec(b1),
                full_spec(w_out),
                full_spec(b_out),
            ],
            out_specs=pl.BlockSpec((1, C_out, chunk_t), lambda b, i: (b, 0, i)),
            scratch_shapes=[
                pltpu.VMEM((dim, W), jnp.float32),
                pltpu.VMEM((3 * F_, W), mm),
                pltpu.SemaphoreType.DMA(()),
            ]),
        compiler_params=pltpu.CompilerParams(
            dimension_semantics=("parallel", "parallel"),
            vmem_limit_bytes=vmem_limit),
        cost_estimate=pl.CostEstimate(flops=flops, transcendentals=0,
                                      bytes_accessed=bytes_accessed),
    )(x_padded, w_in, b_in, wd_fused, bd, w1, b1, w_out, b_out)

    return out[:, :, :T]


# ---------------------------------------------------------------------------
# Pure-JAX reference (lax.conv_general_dilated) for the correctness check
# ---------------------------------------------------------------------------
def refine_action_ref(x, params, num_layers):
    def conv1d(x, w_oih, b, dilation=1, padding=0):
        out = lax.conv_general_dilated(
            x, w_oih, window_strides=(1,), padding=[(padding, padding)],
            rhs_dilation=(dilation,), dimension_numbers=("NCH", "OIH", "NCH"))
        return out + b[None, :, None]

    feat = conv1d(x, params["w_in"][:, :, None], params["b_in"][:, 0])
    for l in range(num_layers):
        d = 2 ** l
        w_oih = jnp.transpose(params["wd"][l], (1, 2, 0))  # (Cout, Cin, 3)
        h = jax.nn.relu(conv1d(feat, w_oih, params["bd"][l, :, 0],
                               dilation=d, padding=d))
        h = conv1d(h, params["w1"][l][:, :, None], params["b1"][l, :, 0])
        feat = feat + h
    return conv1d(feat, params["w_out"][:, :, None], params["b_out"][:, 0])


# ---------------------------------------------------------------------------
# Main
# ---------------------------------------------------------------------------
if __name__ == "__main__":
    num_layers = 3
    num_f_maps = 32
    dim = 16
    num_classes = 8
    N, T = 2, 400    # T not a multiple of 128 -> exercises padding / masking paths.

    key = jax.random.PRNGKey(0)
    keys = jax.random.split(key, 10)

    params = {
        "w_in":  0.1 * jax.random.normal(keys[0], (num_f_maps, dim), jnp.float32),
        "b_in":  0.1 * jax.random.normal(keys[1], (num_f_maps, 1), jnp.float32),
        # dilated conv taps stored as (L, 3, Cout, Cin); tap k corresponds to x[t + (k-1)*d]
        "wd":    0.1 * jax.random.normal(keys[2], (num_layers, 3, num_f_maps, num_f_maps), jnp.float32),
        "bd":    0.1 * jax.random.normal(keys[3], (num_layers, num_f_maps, 1), jnp.float32),
        "w1":    0.1 * jax.random.normal(keys[4], (num_layers, num_f_maps, num_f_maps), jnp.float32),
        "b1":    0.1 * jax.random.normal(keys[5], (num_layers, num_f_maps, 1), jnp.float32),
        "w_out": 0.1 * jax.random.normal(keys[6], (num_classes, num_f_maps), jnp.float32),
        "b_out": 0.1 * jax.random.normal(keys[7], (num_classes, 1), jnp.float32),
    }

    x = jax.random.normal(keys[8], (N, dim, T), jnp.float32)

    ref = jax.block_until_ready(refine_action_ref(x, params, num_layers))

    # Default auto tiling: whole-padded-sequence-per-batch (no halo), f32 matmuls.
    out_f32 = jax.block_until_ready(
        refine_action(x, params, num_layers, matmul_dtype=jnp.float32))
    assert out_f32.shape == (N, num_classes, T), out_f32.shape
    assert jnp.allclose(out_f32, ref, rtol=1e-3, atol=1e-3), \
        float(jnp.max(jnp.abs(out_f32 - ref)))

    # Explicit small chunk: exercises the halo-tiled fallback (manual window DMA,
    # 128-lane halo, receptive-field masking) used for very long sequences / N==1.
    out_tiled = jax.block_until_ready(
        refine_action(x, params, num_layers, chunk_t=128, matmul_dtype=jnp.float32))
    assert out_tiled.shape == (N, num_classes, T), out_tiled.shape
    assert jnp.allclose(out_tiled, ref, rtol=1e-3, atol=1e-3), \
        float(jnp.max(jnp.abs(out_tiled - ref)))

    # bf16 matmul operands (f32 biases / ReLU / residual accumulator): the optional
    # perf config for v6e/v7x (looser tolerance due to bf16 rounding).
    out_bf16 = jax.block_until_ready(
        refine_action(x, params, num_layers, matmul_dtype=jnp.bfloat16))
    assert out_bf16.shape == (N, num_classes, T), out_bf16.shape
    assert jnp.allclose(out_bf16, ref, rtol=5e-2, atol=5e-2), \
        float(jnp.max(jnp.abs(out_bf16 - ref)))

    print("KERNEL_OK")
</pallas_src>

<mosaic_0001>
module attributes {stable_mosaic.version = 11 : i64} {
  func.func @refine_kernel(%arg0: i32, %arg1: i32, %arg2: memref<2x16x512xf32, #tpu.memory_space<any>>, %arg3: memref<32x16xf32, #tpu.memory_space<vmem>>, %arg4: memref<32x1xf32, #tpu.memory_space<vmem>>, %arg5: memref<3x32x96xf32, #tpu.memory_space<vmem>>, %arg6: memref<3x32x1xf32, #tpu.memory_space<vmem>>, %arg7: memref<3x32x32xf32, #tpu.memory_space<vmem>>, %arg8: memref<3x32x1xf32, #tpu.memory_space<vmem>>, %arg9: memref<8x32xf32, #tpu.memory_space<vmem>>, %arg10: memref<8x1xf32, #tpu.memory_space<vmem>>, %arg11: memref<1x8x512xf32, #tpu.memory_space<vmem>>, %arg12: memref<16x512xf32, #tpu.memory_space<vmem>>, %arg13: memref<96x512xf32, #tpu.memory_space<vmem>>, %arg14: memref<!tpu.dma_semaphore, #tpu.memory_space<semaphore_mem>>) attributes {dimension_semantics = [#tpu.dimension_semantics<parallel>, #tpu.dimension_semantics<parallel>], iteration_bounds = array<i64: 2, 1>, scalar_prefetch = 0 : i64, scratch_operands = 3 : i64, tpu.core_type = #tpu.core_type<tc>, window_params = [{}, {pipeline_mode = #tpu.pipeline_mode<synchronous>, transform_indices = @transform_1, window_bounds = array<i64: 32, 16>}, {pipeline_mode = #tpu.pipeline_mode<synchronous>, transform_indices = @transform_2, window_bounds = array<i64: 32, 1>}, {pipeline_mode = #tpu.pipeline_mode<synchronous>, transform_indices = @transform_3, window_bounds = array<i64: 3, 32, 96>}, {pipeline_mode = #tpu.pipeline_mode<synchronous>, transform_indices = @transform_4, window_bounds = array<i64: 3, 32, 1>}, {pipeline_mode = #tpu.pipeline_mode<synchronous>, transform_indices = @transform_5, window_bounds = array<i64: 3, 32, 32>}, {pipeline_mode = #tpu.pipeline_mode<synchronous>, transform_indices = @transform_6, window_bounds = array<i64: 3, 32, 1>}, {pipeline_mode = #tpu.pipeline_mode<synchronous>, transform_indices = @transform_7, window_bounds = array<i64: 8, 32>}, {pipeline_mode = #tpu.pipeline_mode<synchronous>, transform_indices = @transform_8, window_bounds = array<i64: 8, 1>}, {transform_indices = @transform_9, window_bounds = array<i64: 1, 8, 512>}]} {
    %c512_i32 = arith.constant 512 : i32
    %0 = arith.muli %arg1, %c512_i32 : i32
    %1 = tpu.assume_multiple %0, 128 : i32
    %c0_i32 = arith.constant 0 : i32
    %2 = tpu.memref_slice %arg2[%arg0, %c0_i32, %1] : memref<2x16x512xf32, #tpu.memory_space<any>> -> memref<1x16x512xf32, #tpu.memory_space<any>>
    %3 = tpu.memref_squeeze %2 : memref<1x16x512xf32, #tpu.memory_space<any>> -> memref<16x512xf32, #tpu.memory_space<any>>
    tpu.enqueue_dma source(%3 : memref<16x512xf32, #tpu.memory_space<any>>) target(%arg12 : memref<16x512xf32, #tpu.memory_space<vmem>>) target_semaphore(%arg14 : memref<!tpu.dma_semaphore, #tpu.memory_space<semaphore_mem>>)
    %c0_i32_0 = arith.constant 0 : i32
    %4 = tpu.memref_slice %arg2[%arg0, %c0_i32_0, %1] : memref<2x16x512xf32, #tpu.memory_space<any>> -> memref<1x16x512xf32, #tpu.memory_space<any>>
    %5 = tpu.memref_squeeze %4 : memref<1x16x512xf32, #tpu.memory_space<any>> -> memref<16x512xf32, #tpu.memory_space<any>>
    tpu.wait_dma2 semaphore(%arg14 : memref<!tpu.dma_semaphore, #tpu.memory_space<semaphore_mem>>) src(%5 : memref<16x512xf32, #tpu.memory_space<any>>) dst(%arg12 : memref<16x512xf32, #tpu.memory_space<vmem>>)
    %6 = tpu.iota {dimensions = array<i32: 1>} : vector<1x512xi32>
    %c512_i32_1 = arith.constant 512 : i32
    %7 = arith.muli %arg1, %c512_i32_1 : i32
    %8 = vector.broadcast %7 : i32 to vector<1x512xi32>
    %9 = arith.addi %6, %8 : vector<1x512xi32>
    %c0_i32_2 = arith.constant 0 : i32
    %10 = vector.broadcast %c0_i32_2 : i32 to vector<1x512xi32>
    %11 = arith.subi %9, %10 : vector<1x512xi32>
    %c0_i32_3 = arith.constant 0 : i32
    %12 = vector.broadcast %c0_i32_3 : i32 to vector<1x512xi32>
    %13 = arith.cmpi sge, %11, %12 : vector<1x512xi32>
    %c400_i32 = arith.constant 400 : i32
    %14 = vector.broadcast %c400_i32 : i32 to vector<1x512xi32>
    %15 = arith.cmpi slt, %11, %14 : vector<1x512xi32>
    %16 = arith.andi %13, %15 : vector<1x512xi1>
    %c0 = arith.constant 0 : index
    %c0_4 = arith.constant 0 : index
    %17 = vector.load %arg3[%c0, %c0_4] : memref<32x16xf32, #tpu.memory_space<vmem>>, vector<32x16xf32>
    %c0_5 = arith.constant 0 : index
    %c0_6 = arith.constant 0 : index
    %18 = vector.load %arg12[%c0_5, %c0_6] : memref<16x512xf32, #tpu.memory_space<vmem>>, vector<16x512xf32>
    %cst = arith.constant dense<0.000000e+00> : vector<32x512xf32>
    %19 = tpu.matmul %17, %18, %cst {dimension_numbers = #tpu.dot_dimension_numbers<[1], [0], [0], [1], [0, 0, 1, 1], [], []>} : vector<32x16xf32>, vector<16x512xf32>, vector<32x512xf32> -> vector<32x512xf32>
    %c0_7 = arith.constant 0 : index
    %c0_8 = arith.constant 0 : index
    %20 = vector.load %arg4[%c0_7, %c0_8] : memref<32x1xf32, #tpu.memory_space<vmem>>, vector<32x1xf32>
    %21 = vector.broadcast %20 : vector<32x1xf32> to vector<32x512xf32>
    %22 = arith.addf %19, %21 : vector<32x512xf32>
    %cst_9 = arith.constant 0.000000e+00 : f32
    %23 = vector.shape_cast %16 : vector<1x512xi1> to vector<1x512xi1>
    %24 = vector.broadcast %23 : vector<1x512xi1> to vector<32x512xi1>
    %25 = vector.broadcast %cst_9 : f32 to vector<32x512xf32>
    %26 = arith.select %24, %22, %25 : vector<32x512xi1>, vector<32x512xf32>
    %c1_i32 = arith.constant 1 : i32
    %27 = tpu.dynamic_rotate %26 by %c1_i32 dim 1 : vector<32x512xf32>, i32 -> vector<32x512xf32>
    %c0_10 = arith.constant 0 : index
    %c0_11 = arith.constant 0 : index
    %28 = vector.load %arg13[%c0_10, %c0_11] : memref<96x512xf32, #tpu.memory_space<vmem>>, vector<32x512xf32>
    tpu.vector_store %arg13[%c0_10, %c0_11], %27 {strides = array<i32>} : memref<96x512xf32, #tpu.memory_space<vmem>>, vector<32x512xf32>,
    %c32 = arith.constant 32 : index
    %c0_12 = arith.constant 0 : index
    %29 = vector.load %arg13[%c32, %c0_12] : memref<96x512xf32, #tpu.memory_space<vmem>>, vector<32x512xf32>
    tpu.vector_store %arg13[%c32, %c0_12], %26 {strides = array<i32>} : memref<96x512xf32, #tpu.memory_space<vmem>>, vector<32x512xf32>,
    %c511_i32 = arith.constant 511 : i32
    %30 = tpu.dynamic_rotate %26 by %c511_i32 dim 1 : vector<32x512xf32>, i32 -> vector<32x512xf32>
    %c64 = arith.constant 64 : index
    %c0_13 = arith.constant 0 : index
    %31 = vector.load %arg13[%c64, %c0_13] : memref<96x512xf32, #tpu.memory_space<vmem>>, vector<32x512xf32>
    tpu.vector_store %arg13[%c64, %c0_13], %30 {strides = array<i32>} : memref<96x512xf32, #tpu.memory_space<vmem>>, vector<32x512xf32>,
    %c0_14 = arith.constant 0 : index
    %c0_15 = arith.constant 0 : index
    %c0_16 = arith.constant 0 : index
    %32 = vector.load %arg5[%c0_14, %c0_15, %c0_16] : memref<3x32x96xf32, #tpu.memory_space<vmem>>, vector<1x32x96xf32>
    %33 = vector.shape_cast %32 : vector<1x32x96xf32> to vector<32x96xf32>
    %c0_17 = arith.constant 0 : index
    %c0_18 = arith.constant 0 : index
    %34 = vector.load %arg13[%c0_17, %c0_18] : memref<96x512xf32, #tpu.memory_space<vmem>>, vector<96x512xf32>
    %cst_19 = arith.constant dense<0.000000e+00> : vector<32x512xf32>
    %35 = tpu.matmul %33, %34, %cst_19 {dimension_numbers = #tpu.dot_dimension_numbers<[1], [0], [0], [1], [0, 0, 1, 1], [], []>} : vector<32x96xf32>, vector<96x512xf32>, vector<32x512xf32> -> vector<32x512xf32>
    %c0_20 = arith.constant 0 : index
    %c0_21 = arith.constant 0 : index
    %c0_22 = arith.constant 0 : index
    %36 = vector.load %arg6[%c0_20, %c0_21, %c0_22] : memref<3x32x1xf32, #tpu.memory_space<vmem>>, vector<1x32x1xf32>
    %37 = vector.shape_cast %36 : vector<1x32x1xf32> to vector<32x1xf32>
    %38 = vector.broadcast %37 : vector<32x1xf32> to vector<32x512xf32>
    %39 = arith.addf %35, %38 : vector<32x512xf32>
    %cst_23 = arith.constant 0.000000e+00 : f32
    %40 = vector.broadcast %cst_23 : f32 to vector<32x512xf32>
    %41 = arith.maximumf %39, %40 : vector<32x512xf32>
    %c0_24 = arith.constant 0 : index
    %c0_25 = arith.constant 0 : index
    %c0_26 = arith.constant 0 : index
    %42 = vector.load %arg7[%c0_24, %c0_25, %c0_26] : memref<3x32x32xf32, #tpu.memory_space<vmem>>, vector<1x32x32xf32>
    %43 = vector.shape_cast %42 : vector<1x32x32xf32> to vector<32x32xf32>
    %cst_27 = arith.constant dense<0.000000e+00> : vector<32x512xf32>
    %44 = tpu.matmul %43, %41, %cst_27 {dimension_numbers = #tpu.dot_dimension_numbers<[1], [0], [0], [1], [0, 0, 1, 1], [], []>} : vector<32x32xf32>, vector<32x512xf32>, vector<32x512xf32> -> vector<32x512xf32>
    %c0_28 = arith.constant 0 : index
    %c0_29 = arith.constant 0 : index
    %c0_30 = arith.constant 0 : index
    %45 = vector.load %arg8[%c0_28, %c0_29, %c0_30] : memref<3x32x1xf32, #tpu.memory_space<vmem>>, vector<1x32x1xf32>
    %46 = vector.shape_cast %45 : vector<1x32x1xf32> to vector<32x1xf32>
    %47 = vector.broadcast %46 : vector<32x1xf32> to vector<32x512xf32>
    %48 = arith.addf %44, %47 : vector<32x512xf32>
    %49 = arith.addf %26, %48 : vector<32x512xf32>
    %cst_31 = arith.constant 0.000000e+00 : f32
    %50 = vector.shape_cast %16 : vector<1x512xi1> to vector<1x512xi1>
    %51 = vector.broadcast %50 : vector<1x512xi1> to vector<32x512xi1>
    %52 = vector.broadcast %cst_31 : f32 to vector<32x512xf32>
    %53 = arith.select %51, %49, %52 : vector<32x512xi1>, vector<32x512xf32>
    %c2_i32 = arith.constant 2 : i32
    %54 = tpu.dynamic_rotate %53 by %c2_i32 dim 1 : vector<32x512xf32>, i32 -> vector<32x512xf32>
    %c0_32 = arith.constant 0 : index
    %c0_33 = arith.constant 0 : index
    %55 = vector.load %arg13[%c0_32, %c0_33] : memref<96x512xf32, #tpu.memory_space<vmem>>, vector<32x512xf32>
    tpu.vector_store %arg13[%c0_32, %c0_33], %54 {strides = array<i32>} : memref<96x512xf32, #tpu.memory_space<vmem>>, vector<32x512xf32>,
    %c32_34 = arith.constant 32 : index
    %c0_35 = arith.constant 0 : index
    %56 = vector.load %arg13[%c32_34, %c0_35] : memref<96x512xf32, #tpu.memory_space<vmem>>, vector<32x512xf32>
    tpu.vector_store %arg13[%c32_34, %c0_35], %53 {strides = array<i32>} : memref<96x512xf32, #tpu.memory_space<vmem>>, vector<32x512xf32>,
    %c510_i32 = arith.constant 510 : i32
    %57 = tpu.dynamic_rotate %53 by %c510_i32 dim 1 : vector<32x512xf32>, i32 -> vector<32x512xf32>
    %c64_36 = arith.constant 64 : index
    %c0_37 = arith.constant 0 : index
    %58 = vector.load %arg13[%c64_36, %c0_37] : memref<96x512xf32, #tpu.memory_space<vmem>>, vector<32x512xf32>
    tpu.vector_store %arg13[%c64_36, %c0_37], %57 {strides = array<i32>} : memref<96x512xf32, #tpu.memory_space<vmem>>, vector<32x512xf32>,
    %c1 = arith.constant 1 : index
    %c0_38 = arith.constant 0 : index
    %c0_39 = arith.constant 0 : index
    %59 = vector.load %arg5[%c1, %c0_38, %c0_39] : memref<3x32x96xf32, #tpu.memory_space<vmem>>, vector<1x32x96xf32>
    %60 = vector.shape_cast %59 : vector<1x32x96xf32> to vector<32x96xf32>
    %c0_40 = arith.constant 0 : index
    %c0_41 = arith.constant 0 : index
    %61 = vector.load %arg13[%c0_40, %c0_41] : memref<96x512xf32, #tpu.memory_space<vmem>>, vector<96x512xf32>
    %cst_42 = arith.constant dense<0.000000e+00> : vector<32x512xf32>
    %62 = tpu.matmul %60, %61, %cst_42 {dimension_numbers = #tpu.dot_dimension_numbers<[1], [0], [0], [1], [0, 0, 1, 1], [], []>} : vector<32x96xf32>, vector<96x512xf32>, vector<32x512xf32> -> vector<32x512xf32>
    %c1_43 = arith.constant 1 : index
    %c0_44 = arith.constant 0 : index
    %c0_45 = arith.constant 0 : index
    %63 = vector.load %arg6[%c1_43, %c0_44, %c0_45] : memref<3x32x1xf32, #tpu.memory_space<vmem>>, vector<1x32x1xf32>
    %64 = vector.shape_cast %63 : vector<1x32x1xf32> to vector<32x1xf32>
    %65 = vector.broadcast %64 : vector<32x1xf32> to vector<32x512xf32>
    %66 = arith.addf %62, %65 : vector<32x512xf32>
    %cst_46 = arith.constant 0.000000e+00 : f32
    %67 = vector.broadcast %cst_46 : f32 to vector<32x512xf32>
    %68 = arith.maximumf %66, %67 : vector<32x512xf32>
    %c1_47 = arith.constant 1 : index
    %c0_48 = arith.constant 0 : index
    %c0_49 = arith.constant 0 : index
    %69 = vector.load %arg7[%c1_47, %c0_48, %c0_49] : memref<3x32x32xf32, #tpu.memory_space<vmem>>, vector<1x32x32xf32>
    %70 = vector.shape_cast %69 : vector<1x32x32xf32> to vector<32x32xf32>
    %cst_50 = arith.constant dense<0.000000e+00> : vector<32x512xf32>
    %71 = tpu.matmul %70, %68, %cst_50 {dimension_numbers = #tpu.dot_dimension_numbers<[1], [0], [0], [1], [0, 0, 1, 1], [], []>} : vector<32x32xf32>, vector<32x512xf32>, vector<32x512xf32> -> vector<32x512xf32>
    %c1_51 = arith.constant 1 : index
    %c0_52 = arith.constant 0 : index
    %c0_53 = arith.constant 0 : index
    %72 = vector.load %arg8[%c1_51, %c0_52, %c0_53] : memref<3x32x1xf32, #tpu.memory_space<vmem>>, vector<1x32x1xf32>
    %73 = vector.shape_cast %72 : vector<1x32x1xf32> to vector<32x1xf32>
    %74 = vector.broadcast %73 : vector<32x1xf32> to vector<32x512xf32>
    %75 = arith.addf %71, %74 : vector<32x512xf32>
    %76 = arith.addf %53, %75 : vector<32x512xf32>
    %cst_54 = arith.constant 0.000000e+00 : f32
    %77 = vector.shape_cast %16 : vector<1x512xi1> to vector<1x512xi1>
    %78 = vector.broadcast %77 : vector<1x512xi1> to vector<32x512xi1>
    %79 = vector.broadcast %cst_54 : f32 to vector<32x512xf32>
    %80 = arith.select %78, %76, %79 : vector<32x512xi1>, vector<32x512xf32>
    %c4_i32 = arith.constant 4 : i32
    %81 = tpu.dynamic_rotate %80 by %c4_i32 dim 1 : vector<32x512xf32>, i32 -> vector<32x512xf32>
    %c0_55 = arith.constant 0 : index
    %c0_56 = arith.constant 0 : index
    %82 = vector.load %arg13[%c0_55, %c0_56] : memref<96x512xf32, #tpu.memory_space<vmem>>, vector<32x512xf32>
    tpu.vector_store %arg13[%c0_55, %c0_56], %81 {strides = array<i32>} : memref<96x512xf32, #tpu.memory_space<vmem>>, vector<32x512xf32>,
    %c32_57 = arith.constant 32 : index
    %c0_58 = arith.constant 0 : index
    %83 = vector.load %arg13[%c32_57, %c0_58] : memref<96x512xf32, #tpu.memory_space<vmem>>, vector<32x512xf32>
    tpu.vector_store %arg13[%c32_57, %c0_58], %80 {strides = array<i32>} : memref<96x512xf32, #tpu.memory_space<vmem>>, vector<32x512xf32>,
    %c508_i32 = arith.constant 508 : i32
    %84 = tpu.dynamic_rotate %80 by %c508_i32 dim 1 : vector<32x512xf32>, i32 -> vector<32x512xf32>
    %c64_59 = arith.constant 64 : index
    %c0_60 = arith.constant 0 : index
    %85 = vector.load %arg13[%c64_59, %c0_60] : memref<96x512xf32, #tpu.memory_space<vmem>>, vector<32x512xf32>
    tpu.vector_store %arg13[%c64_59, %c0_60], %84 {strides = array<i32>} : memref<96x512xf32, #tpu.memory_space<vmem>>, vector<32x512xf32>,
    %c2 = arith.constant 2 : index
    %c0_61 = arith.constant 0 : index
    %c0_62 = arith.constant 0 : index
    %86 = vector.load %arg5[%c2, %c0_61, %c0_62] : memref<3x32x96xf32, #tpu.memory_space<vmem>>, vector<1x32x96xf32>
    %87 = vector.shape_cast %86 : vector<1x32x96xf32> to vector<32x96xf32>
    %c0_63 = arith.constant 0 : index
    %c0_64 = arith.constant 0 : index
    %88 = vector.load %arg13[%c0_63, %c0_64] : memref<96x512xf32, #tpu.memory_space<vmem>>, vector<96x512xf32>
    %cst_65 = arith.constant dense<0.000000e+00> : vector<32x512xf32>
    %89 = tpu.matmul %87, %88, %cst_65 {dimension_numbers = #tpu.dot_dimension_numbers<[1], [0], [0], [1], [0, 0, 1, 1], [], []>} : vector<32x96xf32>, vector<96x512xf32>, vector<32x512xf32> -> vector<32x512xf32>
    %c2_66 = arith.constant 2 : index
    %c0_67 = arith.constant 0 : index
    %c0_68 = arith.constant 0 : index
    %90 = vector.load %arg6[%c2_66, %c0_67, %c0_68] : memref<3x32x1xf32, #tpu.memory_space<vmem>>, vector<1x32x1xf32>
    %91 = vector.shape_cast %90 : vector<1x32x1xf32> to vector<32x1xf32>
    %92 = vector.broadcast %91 : vector<32x1xf32> to vector<32x512xf32>
    %93 = arith.addf %89, %92 : vector<32x512xf32>
    %cst_69 = arith.constant 0.000000e+00 : f32
    %94 = vector.broadcast %cst_69 : f32 to vector<32x512xf32>
    %95 = arith.maximumf %93, %94 : vector<32x512xf32>
    %c2_70 = arith.constant 2 : index
    %c0_71 = arith.constant 0 : index
    %c0_72 = arith.constant 0 : index
    %96 = vector.load %arg7[%c2_70, %c0_71, %c0_72] : memref<3x32x32xf32, #tpu.memory_space<vmem>>, vector<1x32x32xf32>
    %97 = vector.shape_cast %96 : vector<1x32x32xf32> to vector<32x32xf32>
    %cst_73 = arith.constant dense<0.000000e+00> : vector<32x512xf32>
    %98 = tpu.matmul %97, %95, %cst_73 {dimension_numbers = #tpu.dot_dimension_numbers<[1], [0], [0], [1], [0, 0, 1, 1], [], []>} : vector<32x32xf32>, vector<32x512xf32>, vector<32x512xf32> -> vector<32x512xf32>
    %c2_74 = arith.constant 2 : index
    %c0_75 = arith.constant 0 : index
    %c0_76 = arith.constant 0 : index
    %99 = vector.load %arg8[%c2_74, %c0_75, %c0_76] : memref<3x32x1xf32, #tpu.memory_space<vmem>>, vector<1x32x1xf32>
    %100 = vector.shape_cast %99 : vector<1x32x1xf32> to vector<32x1xf32>
    %101 = vector.broadcast %100 : vector<32x1xf32> to vector<32x512xf32>
    %102 = arith.addf %98, %101 : vector<32x512xf32>
    %103 = arith.addf %80, %102 : vector<32x512xf32>
    %cst_77 = arith.constant 0.000000e+00 : f32
    %104 = vector.shape_cast %16 : vector<1x512xi1> to vector<1x512xi1>
    %105 = vector.broadcast %104 : vector<1x512xi1> to vector<32x512xi1>
    %106 = vector.broadcast %cst_77 : f32 to vector<32x512xf32>
    %107 = arith.select %105, %103, %106 : vector<32x512xi1>, vector<32x512xf32>
    %c0_78 = arith.constant 0 : index
    %c0_79 = arith.constant 0 : index
    %108 = vector.load %arg9[%c0_78, %c0_79] : memref<8x32xf32, #tpu.memory_space<vmem>>, vector<8x32xf32>
    %cst_80 = arith.constant dense<0.000000e+00> : vector<8x512xf32>
    %109 = tpu.matmul %108, %107, %cst_80 {dimension_numbers = #tpu.dot_dimension_numbers<[1], [0], [0], [1], [0, 0, 1, 1], [], []>} : vector<8x32xf32>, vector<32x512xf32>, vector<8x512xf32> -> vector<8x512xf32>
    %c0_81 = arith.constant 0 : index
    %c0_82 = arith.constant 0 : index
    %110 = vector.load %arg10[%c0_81, %c0_82] : memref<8x1xf32, #tpu.memory_space<vmem>>, vector<8x1xf32>
    %111 = vector.broadcast %110 : vector<8x1xf32> to vector<8x512xf32>
    %112 = arith.addf %109, %111 : vector<8x512xf32>
    %c0_83 = arith.constant 0 : index
    %c0_84 = arith.constant 0 : index
    %c0_85 = arith.constant 0 : index
    %113 = vector.load %arg11[%c0_83, %c0_84, %c0_85] : memref<1x8x512xf32, #tpu.memory_space<vmem>>, vector<1x8x512xf32>
    %114 = vector.shape_cast %113 : vector<1x8x512xf32> to vector<8x512xf32>
    %115 = vector.shape_cast %112 : vector<8x512xf32> to vector<1x8x512xf32>
    tpu.vector_store %arg11[%c0_83, %c0_84, %c0_85], %115 {strides = array<i32>} : memref<1x8x512xf32, #tpu.memory_space<vmem>>, vector<1x8x512xf32>,
    return
  }
  func.func @transform_1(%arg0: i32, %arg1: i32) -> (i32, i32) {
    %c0_i32 = arith.constant 0 : i32
    %c0_i32_0 = arith.constant 0 : i32
    %c0_i32_1 = arith.constant 0 : i32
    return %c0_i32, %c0_i32_0 : i32, i32
  }
  func.func @transform_2(%arg0: i32, %arg1: i32) -> (i32, i32) {
    %c0_i32 = arith.constant 0 : i32
    %c0_i32_0 = arith.constant 0 : i32
    %c0_i32_1 = arith.constant 0 : i32
    return %c0_i32, %c0_i32_0 : i32, i32
  }
  func.func @transform_3(%arg0: i32, %arg1: i32) -> (i32, i32, i32) {
    %c0_i32 = arith.constant 0 : i32
    %c0_i32_0 = arith.constant 0 : i32
    %c0_i32_1 = arith.constant 0 : i32
    %c0_i32_2 = arith.constant 0 : i32
    return %c0_i32, %c0_i32_0, %c0_i32_1 : i32, i32, i32
  }
  func.func @transform_4(%arg0: i32, %arg1: i32) -> (i32, i32, i32) {
    %c0_i32 = arith.constant 0 : i32
    %c0_i32_0 = arith.constant 0 : i32
    %c0_i32_1 = arith.constant 0 : i32
    %c0_i32_2 = arith.constant 0 : i32
    return %c0_i32, %c0_i32_0, %c0_i32_1 : i32, i32, i32
  }
  func.func @transform_5(%arg0: i32, %arg1: i32) -> (i32, i32, i32) {
    %c0_i32 = arith.constant 0 : i32
    %c0_i32_0 = arith.constant 0 : i32
    %c0_i32_1 = arith.constant 0 : i32
    %c0_i32_2 = arith.constant 0 : i32
    return %c0_i32, %c0_i32_0, %c0_i32_1 : i32, i32, i32
  }
  func.func @transform_6(%arg0: i32, %arg1: i32) -> (i32, i32, i32) {
    %c0_i32 = arith.constant 0 : i32
    %c0_i32_0 = arith.constant 0 : i32
    %c0_i32_1 = arith.constant 0 : i32
    %c0_i32_2 = arith.constant 0 : i32
    return %c0_i32, %c0_i32_0, %c0_i32_1 : i32, i32, i32
  }
  func.func @transform_7(%arg0: i32, %arg1: i32) -> (i32, i32) {
    %c0_i32 = arith.constant 0 : i32
    %c0_i32_0 = arith.constant 0 : i32
    %c0_i32_1 = arith.constant 0 : i32
    return %c0_i32, %c0_i32_0 : i32, i32
  }
  func.func @transform_8(%arg0: i32, %arg1: i32) -> (i32, i32) {
    %c0_i32 = arith.constant 0 : i32
    %c0_i32_0 = arith.constant 0 : i32
    %c0_i32_1 = arith.constant 0 : i32
    return %c0_i32, %c0_i32_0 : i32, i32
  }
  func.func @transform_9(%arg0: i32, %arg1: i32) -> (i32, i32, i32) {
    %c0_i32 = arith.constant 0 : i32
    %c0_i32_0 = arith.constant 0 : i32
    return %arg0, %c0_i32, %arg1 : i32, i32, i32
  }
}

</mosaic_0001>

<bundles_post_ra>
// kernel: tpu_custom_call.1
= control target key start
LH: loop header
LB: loop body
LE: loop exit
PB: predicated region body
PF: predicated region fallthrough
CT: control target
= control target key end

     0   :  { %14 = vsyncpa [#allocation6], 0  ;;  %s4436_s0 = inlined_call_operand.vmem [shape: f32[2,16,512], index: 0, kind: input, shape index: {}]   ;;  %s4437_s1 = inlined_call_operand.vmem [shape: f32[32,16], index: 1, kind: input, shape index: {}]   ;;  %s4438_s2 = inlined_call_operand.vmem [shape: f32[32,1], index: 2, kind: input, shape index: {}]   ;;  %s4439_s3 = inlined_call_operand.vmem [shape: f32[3,32,96], index: 3, kind: input, shape index: {}]   ;;  %s4440_s4 = inlined_call_operand.vmem [shape: f32[3,32,1], index: 4, kind: input, shape index: {}]   ;;  %s4441_s5 = inlined_call_operand.hbm [shape: f32[3,32,32], index: 5, kind: input, shape index: {}]   ;;  %s4442_s6 = inlined_call_operand.vmem [shape: f32[3,32,1], index: 6, kind: input, shape index: {}]   ;;  %s4443_s7 = inlined_call_operand.vmem [shape: f32[8,32], index: 7, kind: input, shape index: {}]   ;;  %s4444_s8 = inlined_call_operand.vmem [shape: f32[8,1], index: 8, kind: input, shape index: {}]   ;;  %s4445_s9 = inlined_call_operand.hbm [shape: f32[2,8,512], index: 9, kind: output, shape index: {}]  }
   0x1   :  { %15 = vsyncpa [#allocation7], 0 }
   0x2   :  { %17 = vsyncpa [#allocation7 + $0x1], 0  ;;  %s3326_s30 = smov 0   ;;  %s3328_s10 = smov 0  }
   0x3   :  { %s3330_s11 = smov 0   ;;  %s3332_s12 = smov 0  }
   0x4   :  { %s3334_s13 = smov 0   ;;  %s3336_s14 = smov 0  }
   0x5 LB: > { %s2961_s15 = sadd.s32 4294967295, %s3262_s14   ;;  %s2962_s16 = sadd.s32 4294967294, %s3262_s14   ;;  %s3262_s14 = sphi %s3336_s14, %s23_s14   ;;  %s3258_s13 = sphi %s3334_s13, %s4457_s13   ;;  %s3254_s12 = sphi %s3332_s12, %s4456_s12   ;;  %s3250_s11 = sphi %s3330_s11, %s4455_s11   ;;  %s3246_s10 = sphi %s3328_s10, %s4454_s10   ;;  %s3242_s30 = sphi %s3326_s30, %s4453_s30  }
   0x6   : > { %s35_s17 = sadd.s32 1, %s3258_s13  ;;  %s212_s18 = sadd.s32 1, %s3250_s11 }
   0x7   : > { %p37_p0 = scmp.ge.s32.totalorder %s35_s17, 2  ;;  %p222_p1 = scmp.ne.s32.totalorder %s3250_s11, %s3246_s10 }
   0x8   : > { %p223_p2 = scmp.eq.s32.totalorder %s2961_s15, 1  ;;  %p228_p3 = scmp.ne.s32.totalorder %s3246_s10, %s3242_s30 }
   0x9   : > { %s4459_s17 = smov (%p37_p0, %s35_s17), 0  ;;  %p229_p5 = scmp.eq.s32.totalorder %s2962_s16, 1 }
   0xa   : > { %4447 = sst [smem:[#allocation13_spill]] %s4459_s17  ;;  %p3366_p4 = por %p223_p2, %p222_p1 }
   0xb   : > { %s207_s20 = ssub.s32 %s3258_s13, %s4459_s17  ;;  %p2963_p6 = scmp.ge.s32.totalorder %s3262_s14, 1 }
   0xc   : > { %p210_p7 = scmp.eq.s32.totalorder %s207_s20, 0  ;;  %p3373_p8 = por %p229_p5, %p228_p3 }
   0xd   : > { %p236_p9 = scmp.lt.s32.totalorder %s3262_s14, 3  ;;  %p3385_p11 = scmp.eq.s32.totalorder %s2961_s15, 0 }
   0xe   : > { %s3379_s22 = scalar_select %p210_p7, %s3250_s11, %s212_s18  }
   0xf   : > { %p3381_p10 = pnand %p2963_p6, %p236_p9  ;;  %s3264_s25 = smov [#allocation5]  }
  0x10   : > { %s260_s26 = sshll.u32 %s3264_s25, 4  ;;  %s261_s26 = int_to_ptr.vmem [resolvable:$true] %s260_s26 }
  0x11   : > { %p3082_p12 = pneg %p3381_p10  ;;  %s3165_s27 = scalar_lea.vmem %s261_s26, 1536 }
  0x12   : > { %p3166_p1 = scmp.ne.s32.totalorder %s261_s26, %s3165_s27  ;;  %p3173_p5 = scmp.lt.s32.totalorder %s261_s26, %s261_s26 }
  0x13   : > { %p3083_p13 = pnand %p3385_p11, %p3082_p12  ;;  %p3174_p6 = scmp.lt.s32.totalorder %s3165_s27, %s3165_s27 }
  0x15   : > { %p3156_p0 = pneg %p3083_p13  ;;  %p3175_p7 = por %p3174_p6, %p3173_p5 }
  0x17   : > { %p3168_p2 = pnand %p3166_p1, %p3156_p0 }
  0x19   : > { %p3169_p3 = pneg %p3168_p2 }
  0x1b   : > { %p3176_p9 = pnand %p3175_p7, %p3169_p3 }
  0x1d   : > { %3179 = shalt.err (!%p3176_p9)
}
  0x1e   : > { %s3265_s28 = smov 128   ;;  %s3266_s29 = smov 8  }
  0x1f   : > { %3085 = dma.hbm_to_vmem [thread:$0]  (!%p3083_p13), %s4441_s5, 1536, %s261_s26, [#allocation6], %s3265_s28, %s3265_s28, %s3266_s29  }
  0x20   : > { %285 = sbr.rel (%p3381_p10) target bundleno = 2262 (0x8d6), region = 52 }
  0x25   : > { %3231 = dma.done.wait (%p3385_p11), [#allocation6], 1536  }
  0x26   : > { %3233 = vsyncadd (%p3385_p11), [#allocation6], 4294965760  ;;  %s311_s18 = sand.u32 1, %s3246_s10   ;;  %s3062_s20 = sshll.u32 %s3254_s12, 6 }
  0x27   : > { %s2967_s25 = sshll.u32 %s311_s18, 5  ;;  %s321_s26 = scalar_lea.vmem %s4436_s0, %s3062_s20 }
  0x28   : > { %v355_v0 = vld [vmem:[%s321_s26] sm:$0xff]  ;;  %v357_v1 = vld [vmem:[%s321_s26 + $0x8] sm:$0xff]  ;;  %v359_v2 = vld [vmem:[%s321_s26 + $0x10] sm:$0xff]  ;;  %s3409_s23 = scalar_lea.vmem [#allocation8], %s2967_s25 }
  0x29   : > { %v361_v3 = vld [vmem:[%s321_s26 + $0x18] sm:$0xff]  ;;  %v363_v4 = vld [vmem:[%s321_s26 + $0x20] sm:$0xff]  ;;  %v365_v5 = vld [vmem:[%s321_s26 + $0x28] sm:$0xff] }
  0x2a   : > { %v367_v6 = vld [vmem:[%s321_s26 + $0x30] sm:$0xff]  ;;  %v369_v7 = vld [vmem:[%s321_s26 + $0x38] sm:$0xff] }
  0x2b   : > { %378 = vsyncadd [#allocation4], 1024 }
  0x2c   : > { %3234 = dma.done.wait [#allocation4], 1024 }
  0x2d   : > { %3235 = vsyncadd [#allocation4], 4294966272  ;;  %482 = vmatprep.subr.mxu0 %v365_v5  ;;  %571 = vmatprep.subr.mxu1 %v369_v7  ;;  %v3267_v8 = vmov 0.0   ;;  %vm441_vm0 = vcmask 130048   ;;  %v3268_v9 = vmov 0   ;;  %v405_v10 = vld [vmem:[%s4437_s1] sm:$0xff]  ;;  %v383_v19 = vlaneseq }
  0x2e   : > { %483 = vmatpush1.msra.mxu0 %v363_v4  ;;  %572 = vmatpush1.msra.mxu1 %v367_v6  ;;  %v418_v11 = vld [vmem:[%s4438_s2 + $0x8] sm:$0xff]  ;;  %v420_v13 = vld [vmem:[%s4438_s2 + $0x18] sm:$0xff]  ;;  %v417_v14 = vld [vmem:[%s4438_s2] sm:$0xff]  ;;  %s3269_s20 = smov 127   ;;  %s3270_s25 = smov 1   ;;  %vm878_vm4 = vcmask 785408  }
  0x2f   : > { %484 = vmatprep.subr.mxu0 %v357_v1  ;;  %573 = vmatprep.subr.mxu1 %v361_v3  ;;  %v406_v12 = vld [vmem:[%s4437_s1 + $0x8] sm:$0xff]  ;;  %v419_v15 = vld [vmem:[%s4438_s2 + $0x10] sm:$0xff]  ;;  %v408_v17 = vld [vmem:[%s4437_s1 + $0x18] sm:$0xff]  ;;  %v3453_v21 = vand.u32 127, %v383_v19  ;;  %vm1113_vm5 = vcmask 261120   ;;  %s3271_s28 = smov 126  }
  0x30   : > { %485 = vmatpush1.msra.mxu0 %v355_v0  ;;  %518 = vmatprep.mubr.f32.mxu0 %v3267_v8  ;;  %v407_v16 = vld [vmem:[%s4437_s1 + $0x10] sm:$0xff]  ;;  %v857_v61 = vld [vmem:[%s4440_s4 + $0x18] sm:$0xff]  ;;  %v855_v63 = vld [vmem:[%s4440_s4 + $0x8] sm:$0xff]  ;;  %s3272_s29 = smov 2   ;;  %s3273_s27 = smov 124  }
  0x31   : > { %574 = vmatpush1.msra.mxu1 %v359_v2  ;;  %607 = vmatprep.mubr.f32.mxu1 %v3267_v8  ;;  %v3464_v29 = vadd.s32 384, %v3453_v21  ;;  %v856_v62 = vld [vmem:[%s4440_s4 + $0x10] sm:$0xff]  ;;  %v854_v0 = vld [vmem:[%s4440_s4] sm:$0xff]  ;;  %v1092_v1 = vld [vmem:[%s4442_s6 + $0x18] sm:$0xff]  ;;  %vm769_vm2 = vcmp.lt.s32.totalorder %v3453_v21, 127  ;;  %vm688_vm3 = vcmp.lt.s32.totalorder %v3453_v21, 1 }
  0x32   : > { %3153 = vset.pattern.permute.xlu1 %v3268_v9  ;;  %3152 = vset.pattern.permute.xlu0 %v3268_v9  ;;  %v1091_v2 = vld [vmem:[%s4442_s6 + $0x10] sm:$0xff]  ;;  %v1090_v3 = vld [vmem:[%s4442_s6 + $0x8] sm:$0xff]  ;;  %v1089_v4 = vld [vmem:[%s4442_s6] sm:$0xff]  ;;  %vm1449_vm6 = vcmp.lt.s32.totalorder %v3453_v21, 126  ;;  %vm1368_vm7 = vcmp.lt.s32.totalorder %v3453_v21, 2  ;;  %s3274_s26 = smov 4  }
  0x33   : > { %2970 = vmatmul.mubr.msk.f32.vlgmr.msra.gmra.mxu0 %vm441_vm0, %v405_v10  ;;  %2974 = vmatmul.mubr.msk.f32.vlgmr.msra.gmra.mxu1 %vm441_vm0, %v405_v10  ;;  %vm400_vm1 = vcmp.lt.s32.totalorder %v3464_v29, 400  ;;  %vm2131_vm8 = vcmp.lt.s32.totalorder %v3453_v21, 124  ;;  %vm2050_vm9 = vcmp.lt.s32.totalorder %v3453_v21, 4  ;;  %v3024_v21 = vld [vmem:[%s4439_s3 + $0x50] sm:$0xff]  ;;  %s2873_s17 = sshll.u32 %s3409_s23, 4  ;;  %s3275_s15 = smov [#allocation8]   ;;  %s2874_s17 = int_to_ptr.vmem [resolvable:$true] %s2873_s17 }
  0x34   : > { %524 = vmatprep.mubr.f32.mxu0 %v3267_v8  ;;  %613 = vmatprep.mubr.f32.mxu1 %v3267_v8  ;;  %s3184_s16 = sshll.u32 %s3275_s15, 4  ;;  %s3185_s16 = int_to_ptr.vmem [resolvable:$false] %s3184_s16 }
  0x35   : > { %428 = vperm.xlu1 %3153, %v418_v11   ;;  %438 = vperm.xlu0 %3152, %v420_v13   ;;  %p3187_p13 = scmp.lt.s32.totalorder %s2874_s17, %s3185_s16 }
  0x37   : > { %2971 = vmatmul.mubr.msk.f32.gmra.mxu0 %vm441_vm0, %v406_v12  ;;  %2975 = vmatmul.mubr.msk.f32.gmra.mxu1 %vm441_vm0, %v406_v12 }
  0x38   : > { %530 = vmatprep.mubr.f32.mxu0 %v3267_v8  ;;  %619 = vmatprep.mubr.f32.mxu1 %v3267_v8 }
  0x39   : > { %423 = vperm.xlu1 %3153, %v417_v14   ;;  %433 = vperm.xlu0 %3152, %v419_v15  }
  0x3b   : > { %2972 = vmatmul.mubr.msk.f32.gmra.mxu0 %vm441_vm0, %v407_v16  ;;  %2976 = vmatmul.mubr.msk.f32.gmra.mxu1 %vm441_vm0, %v407_v16 }
  0x3c   : > { %536 = vmatprep.mubr.f32.mxu0 %v3267_v8  ;;  %625 = vmatprep.mubr.f32.mxu1 %v3267_v8 }
  0x3f   : > { %2973 = vmatmul.mubr.msk.f32.gmra.mxu0 %vm441_vm0, %v408_v17  ;;  %2977 = vmatmul.mubr.msk.f32.gmra.mxu1 %vm441_vm0, %v408_v17 }
  0x40   : > { %1044 = vmatprep.mubr.f32.mxu1 %v3267_v8  ;;  %955 = vmatprep.mubr.f32.mxu0 %v3267_v8 }
  0xb0   : > { %v429_v18 = vpop.permute.xlu1 %428  ;;  %v439_v28 = vpop.permute.xlu0 %438 }
  0xb4   : > { %v424_v20 = vpop.permute.xlu1 %423  ;;  %v434_v38 = vpop.permute.xlu0 %433 }
  0xf3   : > { %v520_v22 = vpop.f32.mrf.mxu0  ;;  %v609_v23 = vpop.f32.mrf.mxu1 }
  0xf4   : > { %v3455_v24 = vadd.f32 %v520_v22, %v424_v20  ;;  %v3457_v25 = vadd.f32 %v609_v23, %v424_v20 }
  0xf5   : > { %v522_v26 = vpop.f32.mrf.mxu0  ;;  %v611_v27 = vpop.f32.mrf.mxu1 }
  0xf6   : > { %753 = vrot.lane.b32.xlu0 %v3457_v25, %s3269_s20  ;;  %737 = vrot.lane.b32.xlu1 %v3455_v24, %s3269_s20  ;;  %v3466_v32 = vadd.f32 %v522_v26, %v424_v20  ;;  %v3470_v34 = vadd.f32 %v611_v27, %v424_v20 }
  0xf7   : > { %v526_v30 = vpop.f32.mrf.mxu0  ;;  %v615_v31 = vpop.f32.mrf.mxu1 }
  0xf8   : > { %v3468_v33 = vadd.f32 %v615_v31, %v429_v18  ;;  %v3482_v40 = vsel %vm400_vm1, %v3470_v34, 0.0  ;;  %v3488_v41 = vadd.f32 %v526_v30, %v429_v18 }
  0xf9   : > { %v528_v35 = vpop.f32.mrf.mxu0  ;;  %v617_v36 = vpop.f32.mrf.mxu1 }
  0xfa   : > { %755 = vrot.lane.b32.xlu0 %v3468_v33, %s3269_s20  ;;  %745 = vrot.lane.b32.xlu1 %v3466_v32, %s3269_s20  ;;  %v3477_v37 = vadd.f32 %v528_v35, %v429_v18  ;;  %v3492_v43 = vadd.f32 %v617_v36, %v429_v18 }
  0xfb   : > { %v621_v39 = vpop.f32.mrf.mxu1  ;;  %v532_v44 = vpop.f32.mrf.mxu0 }
  0xfc   : > { %v3490_v42 = vadd.f32 %v621_v39, %v434_v38  ;;  %v3501_v46 = vsel %vm400_vm1, %v3492_v43, 0.0  ;;  %v3507_v48 = vadd.f32 %v532_v44, %v434_v38 }
  0xfd   : > { %v534_v45 = vpop.f32.mrf.mxu0  ;;  %v623_v47 = vpop.f32.mrf.mxu1 }
  0xfe   : > { %747 = vrot.lane.b32.xlu0 %v3477_v37, %s3269_s20  ;;  %761 = vrot.lane.b32.xlu1 %v3482_v40, %s3269_s20  ;;  %v3509_v49 = vadd.f32 %v534_v45, %v434_v38  ;;  %v3511_v50 = vadd.f32 %v623_v47, %v434_v38 }
  0xff   : > { %v538_v51 = vpop.f32.mrf.mxu0  ;;  %v627_v53 = vpop.f32.mrf.mxu1 }
 0x100   : > { %v3517_v52 = vadd.f32 %v538_v51, %v439_v28  ;;  %v3522_v54 = vsel %vm400_vm1, %v3511_v50, 0.0  ;;  %v3528_v55 = vadd.f32 %v627_v53, %v439_v28 }
 0x101   : > { %v629_v56 = vpop.f32.mrf.mxu1  ;;  %v540_v57 = vpop.f32.mrf.mxu0 }
 0x102   : > { %757 = vrot.lane.b32.xlu0 %v3490_v42, %s3269_s20  ;;  %739 = vrot.lane.b32.xlu1 %v3488_v41, %s3269_s20  ;;  %v3534_v58 = vadd.f32 %v629_v56, %v439_v28  ;;  %v3540_v59 = vadd.f32 %v540_v57, %v439_v28 }
 0x104   : > { %v3545_v60 = vsel %vm400_vm1, %v3534_v58, 0.0 }
 0x106   : > { %676 = vrot.lane.b32.xlu0 %v3490_v42, %s3270_s25  ;;  %763 = vrot.lane.b32.xlu1 %v3501_v46, %s3269_s20 }
 0x10a   : > { %749 = vrot.lane.b32.xlu0 %v3509_v49, %s3269_s20  ;;  %741 = vrot.lane.b32.xlu1 %v3507_v48, %s3269_s20 }
 0x10e   : > { %743 = vrot.lane.b32.xlu0 %v3517_v52, %s3269_s20  ;;  %765 = vrot.lane.b32.xlu1 %v3522_v54, %s3269_s20 }
 0x112   : > { %759 = vrot.lane.b32.xlu0 %v3528_v55, %s3269_s20  ;;  %684 = vrot.lane.b32.xlu1 %v3522_v54, %s3270_s25 }
 0x116   : > { %678 = vrot.lane.b32.xlu0 %v3528_v55, %s3270_s25  ;;  %662 = vrot.lane.b32.xlu1 %v3517_v52, %s3270_s25 }
 0x11a   : > { %751 = vrot.lane.b32.xlu0 %v3540_v59, %s3269_s20  ;;  %767 = vrot.lane.b32.xlu1 %v3545_v60, %s3269_s20  ;;  %s3186_s20 = scalar_lea.vmem %s3185_s16, 1024 }
 0x11e   : > { %668 = vrot.lane.b32.xlu0 %v3509_v49, %s3270_s25  ;;  %660 = vrot.lane.b32.xlu1 %v3507_v48, %s3270_s25 }
 0x122   : > { %670 = vrot.lane.b32.xlu0 %v3540_v59, %s3270_s25  ;;  %682 = vrot.lane.b32.xlu1 %v3501_v46, %s3270_s25 }
 0x126   : > { %674 = vrot.lane.b32.xlu0 %v3468_v33, %s3270_s25  ;;  %658 = vrot.lane.b32.xlu1 %v3488_v41, %s3270_s25 }
 0x12a   : > { %666 = vrot.lane.b32.xlu0 %v3477_v37, %s3270_s25  ;;  %686 = vrot.lane.b32.xlu1 %v3545_v60, %s3270_s25 }
 0x12e   : > { %672 = vrot.lane.b32.xlu0 %v3457_v25, %s3270_s25  ;;  %680 = vrot.lane.b32.xlu1 %v3482_v40, %s3270_s25 }
 0x132   : > { %664 = vrot.lane.b32.xlu0 %v3466_v32, %s3270_s25  ;;  %656 = vrot.lane.b32.xlu1 %v3455_v24, %s3270_s25 }
 0x136   : > { %875 = vperm.xlu0 %3152, %v857_v61   ;;  %870 = vperm.xlu1 %3153, %v856_v62  }
 0x13a   : > { %865 = vperm.xlu0 %3152, %v855_v63   ;;  %860 = vperm.xlu1 %3153, %v854_v0  }
 0x13e   : > { %1110 = vperm.xlu0 %3152, %v1092_v1   ;;  %1105 = vperm.xlu1 %3153, %v1091_v2  }
 0x142   : > { %1100 = vperm.xlu0 %3152, %v1090_v3   ;;  %1095 = vperm.xlu1 %3153, %v1089_v4  }
 0x168   : > { %v754_v5 = vpop.permute.xlu0 %753  ;;  %v738_v6 = vpop.permute.xlu1 %737 }
 0x16c   : > { %v756_v7 = vpop.permute.xlu0 %755  ;;  %v746_v9 = vpop.permute.xlu1 %745 }
 0x16d   : > { %v774_v62 = vsel %vm769_vm2, %v746_v9, %v754_v5  ;;  %v778_v2 = vsel %vm769_vm2, %v738_v6, %v746_v9 }
 0x170   : > { %v748_v10 = vpop.permute.xlu0 %747  ;;  %v762_v11 = vpop.permute.xlu1 %761 }
 0x171   : > { %v775_v53 = vsel %vm769_vm2, %v748_v10, %v756_v7  ;;  %v782_v63 = vsel %vm769_vm2, %v762_v11, %v738_v6  ;;  %v770_v3 = vsel %vm769_vm2, %v754_v5, %v762_v11 }
 0x174   : > { %v758_v12 = vpop.permute.xlu0 %757  ;;  %v740_v13 = vpop.permute.xlu1 %739 }
 0x175   : > { %v779_v57 = vsel %vm769_vm2, %v740_v13, %v748_v10 }
 0x178   : > { %v3599_v14 = vpop.permute.xlu0 %676  ;;  %v764_v15 = vpop.permute.xlu1 %763 }
 0x179   : > { %v783_v56 = vsel %vm769_vm2, %v764_v15, %v740_v13  ;;  %v771_v61 = vsel %vm769_vm2, %v756_v7, %v764_v15 }
 0x17c   : > { %v750_v16 = vpop.permute.xlu0 %749  ;;  %v742_v17 = vpop.permute.xlu1 %741 }
 0x17d   : > { %v776_v38 = vsel %vm769_vm2, %v750_v16, %v758_v12  ;;  %v780_v47 = vsel %vm769_vm2, %v742_v17, %v750_v16 }
 0x180   : > { %v744_v18 = vpop.permute.xlu0 %743  ;;  %v766_v19 = vpop.permute.xlu1 %765 }
 0x181   : > { %v784_v39 = vsel %vm769_vm2, %v766_v19, %v742_v17  ;;  %v772_v51 = vsel %vm769_vm2, %v758_v12, %v766_v19 }
 0x184   : > { %v760_v20 = vpop.permute.xlu0 %759  ;;  %v3601_v22 = vpop.permute.xlu1 %684 }
 0x185   : > { %v691_v10 = vsel %vm688_vm3, %v3599_v14, %v3601_v22 }
 0x188   : > { %v3603_v23 = vpop.permute.xlu0 %678  ;;  %v3605_v26 = vpop.permute.xlu1 %662 }
 0x18c   : > { %v752_v27 = vpop.permute.xlu0 %751  ;;  %v768_v28 = vpop.permute.xlu1 %767 }
 0x18d   : > { %v777_v30 = vsel %vm769_vm2, %v752_v27, %v760_v20  ;;  %v785_v31 = vsel %vm769_vm2, %v768_v28, %v744_v18  ;;  %v781_v35 = vsel %vm769_vm2, %v744_v18, %v752_v27  ;;  %v773_v36 = vsel %vm769_vm2, %v760_v20, %v768_v28 }
 0x18e   : > { %899 = vmatprep.subr.mxu0 %v777_v30  ;;  %988 = vmatprep.subr.mxu1 %v785_v31  ;;  %v803_v30 = vld [vmem:[%s4439_s3 + $0x8] sm:$0xff]  ;;  %v804_v31 = vld [vmem:[%s4439_s3 + $0x10] sm:$0xff] }
 0x18f   : > { %900 = vmatpush1.msra.mxu0 %v781_v35  ;;  %989 = vmatpush1.msra.mxu1 %v773_v36  ;;  %v805_v35 = vld [vmem:[%s4439_s3 + $0x18] sm:$0xff] }
 0x190   : > { %901 = vmatprep.subr.mxu0 %v776_v38  ;;  %v669_v44 = vpop.permute.xlu0 %668  ;;  %990 = vmatprep.subr.mxu1 %v784_v39  ;;  %v661_v45 = vpop.permute.xlu1 %660 }
 0x191   : > { %902 = vmatpush1.msra.mxu0 %v780_v47  ;;  %991 = vmatpush1.msra.mxu1 %v772_v51  ;;  %v699_v9 = vsel %vm688_vm3, %v661_v45, %v669_v44  ;;  %v703_v13 = vsel %vm688_vm3, %v3601_v22, %v661_v45  ;;  %v695_v15 = vsel %vm688_vm3, %v669_v44, %v3599_v14 }
 0x192   : > { %903 = vmatprep.subr.mxu0 %v775_v53  ;;  %992 = vmatprep.subr.mxu1 %v783_v56 }
 0x193   : > { %904 = vmatpush1.msra.mxu0 %v779_v57  ;;  %993 = vmatpush1.msra.mxu1 %v771_v61 }
 0x194   : > { %v671_v0 = vpop.permute.xlu0 %670  ;;  %905 = vmatprep.subr.mxu0 %v774_v62  ;;  %994 = vmatprep.subr.mxu1 %v782_v63  ;;  %v683_v1 = vpop.permute.xlu1 %682 }
 0x195   : > { %906 = vmatpush1.msra.mxu0 %v778_v2  ;;  %995 = vmatpush1.msra.mxu1 %v770_v3 }
 0x196   : > { %907 = vmatprep.subr.mxu0 %v3540_v59  ;;  %3064 = vmatprep.subr.msk.mxu1 %vm400_vm1, %v3534_v58 }
 0x197   : > { %908 = vmatpush1.msra.mxu0 %v3517_v52  ;;  %997 = vmatpush1.msra.mxu1 %v3528_v55 }
 0x198   : > { %v675_v4 = vpop.permute.xlu0 %674  ;;  %909 = vmatprep.subr.mxu0 %v3509_v49  ;;  %3065 = vmatprep.subr.msk.mxu1 %vm400_vm1, %v3511_v50  ;;  %v659_v5 = vpop.permute.xlu1 %658 }
 0x199   : > { %910 = vmatpush1.msra.mxu0 %v3507_v48  ;;  %999 = vmatpush1.msra.mxu1 %v3490_v42  ;;  %v690_v17 = vsel %vm688_vm3, %v675_v4, %v683_v1  ;;  %v702_v18 = vsel %vm688_vm3, %v683_v1, %v659_v5 }
 0x19a   : > { %911 = vmatprep.subr.mxu0 %v3477_v37  ;;  %3066 = vmatprep.subr.msk.mxu1 %vm400_vm1, %v3492_v43  ;;  %v700_v43 = vsel %vm688_vm3, %v3605_v26, %v671_v0 }
 0x19b   : > { %912 = vmatpush1.msra.mxu0 %v3488_v41  ;;  %1001 = vmatpush1.msra.mxu1 %v3468_v33 }
 0x19c   : > { %v667_v58 = vpop.permute.xlu0 %666  ;;  %913 = vmatprep.subr.mxu0 %v3466_v32  ;;  %3067 = vmatprep.subr.msk.mxu1 %vm400_vm1, %v3470_v34  ;;  %v687_v50 = vpop.permute.xlu1 %686  ;;  %v696_v34 = vsel %vm688_vm3, %v671_v0, %v3603_v23 }
 0x19d   : > { %v704_v6 = vsel %vm688_vm3, %v687_v50, %v3605_v26  ;;  %914 = vmatpush1.msra.mxu0 %v3455_v24  ;;  %1003 = vmatpush1.msra.mxu1 %v3457_v25  ;;  %v692_v7 = vsel %vm688_vm3, %v3603_v23, %v687_v50  ;;  %v698_v16 = vsel %vm688_vm3, %v659_v5, %v667_v58  ;;  %v802_v23 = vld [vmem:[%s4439_s3] sm:$0xff] }
 0x19e   : > { %915 = vmatprep.subr.mxu0 %v700_v43  ;;  %1004 = vmatprep.subr.mxu1 %v692_v7  ;;  %v694_v19 = vsel %vm688_vm3, %v667_v58, %v675_v4 }
 0x19f   : > { %916 = vmatpush1.msra.mxu0 %v704_v6  ;;  %1005 = vmatpush1.msra.mxu1 %v696_v34 }
 0x1a0   : > { %v673_v11 = vpop.permute.xlu0 %672  ;;  %917 = vmatprep.subr.mxu0 %v699_v9  ;;  %1006 = vmatprep.subr.mxu1 %v691_v10  ;;  %v681_v12 = vpop.permute.xlu1 %680 }
 0x1a1   : > { %918 = vmatpush1.msra.mxu0 %v703_v13  ;;  %1007 = vmatpush1.msra.mxu1 %v695_v15  ;;  %v689_v14 = vsel %vm688_vm3, %v673_v11, %v681_v12 }
 0x1a2   : > { %919 = vmatprep.subr.mxu0 %v698_v16  ;;  %1008 = vmatprep.subr.mxu1 %v690_v17 }
 0x1a3   : > { %920 = vmatpush1.msra.mxu0 %v702_v18  ;;  %1009 = vmatpush1.msra.mxu1 %v694_v19 }
 0x1a4   : > { %v665_v20 = vpop.permute.xlu0 %664  ;;  %1010 = vmatprep.subr.mxu1 %v689_v14  ;;  %v657_v22 = vpop.permute.xlu1 %656 }
 0x1a5   : > { %v693_v26 = vsel %vm688_vm3, %v665_v20, %v673_v11  ;;  %v701_v27 = vsel %vm688_vm3, %v681_v12, %v657_v22  ;;  %v697_v28 = vsel %vm688_vm3, %v657_v22, %v665_v20 }
 0x1a6   : > { %921 = vmatprep.subr.mxu0 %v697_v28  ;;  %1011 = vmatpush1.msra.mxu1 %v693_v26 }
 0x1a7   : > { %922 = vmatpush1.msra.mxu0 %v701_v27  ;;  %2982 = vmatmul.mubr.msk.f32.vlgmr.msra.gmra.mxu1 %vm878_vm4, %v802_v23 }
 0x1a8   : > { %2978 = vmatmul.mubr.msk.f32.vlgmr.msra.gmra.mxu0 %vm878_vm4, %v802_v23  ;;  %1050 = vmatprep.mubr.f32.mxu1 %v3267_v8 }
 0x1a9   : > { %961 = vmatprep.mubr.f32.mxu0 %v3267_v8 }
 0x1ab   : > { %2983 = vmatmul.mubr.msk.f32.gmra.mxu1 %vm878_vm4, %v803_v30 }
 0x1ac   : > { %2979 = vmatmul.mubr.msk.f32.gmra.mxu0 %vm878_vm4, %v803_v30  ;;  %1056 = vmatprep.mubr.f32.mxu1 %v3267_v8 }
 0x1ad   : > { %967 = vmatprep.mubr.f32.mxu0 %v3267_v8 }
 0x1af   : > { %2984 = vmatmul.mubr.msk.f32.gmra.mxu1 %vm878_vm4, %v804_v31 }
 0x1b0   : > { %2980 = vmatmul.mubr.msk.f32.gmra.mxu0 %vm878_vm4, %v804_v31  ;;  %1062 = vmatprep.mubr.f32.mxu1 %v3267_v8 }
 0x1b1   : > { %973 = vmatprep.mubr.f32.mxu0 %v3267_v8  ;;  %v876_v61 = vpop.permute.xlu0 %875  ;;  %v871_v0 = vpop.permute.xlu1 %870 }
 0x1b3   : > { %2985 = vmatmul.mubr.msk.f32.gmra.mxu1 %vm878_vm4, %v805_v35 }
 0x1b4   : > { %2981 = vmatmul.mubr.msk.f32.gmra.mxu0 %vm878_vm4, %v805_v35  ;;  %1279 = vmatprep.mubr.f32.mxu1 %v3267_v8 }
 0x1b5   : > { %1190 = vmatprep.mubr.f32.mxu0 %v3267_v8  ;;  %v866_v43 = vpop.permute.xlu0 %865  ;;  %v861_v13 = vpop.permute.xlu1 %860 }
 0x267   : > { %v1046_v36 = vpop.f32.mrf.mxu1 }
 0x268   : > { %v957_v38 = vpop.f32.mrf.mxu0  ;;  %v1047_v23 = vadd.f32 %v1046_v36, %v861_v13 }
 0x269   : > { %v1048_v39 = vpop.f32.mrf.mxu1  ;;  %v958_v30 = vadd.f32 %v957_v38, %v861_v13  ;;  %v1086_v38 = vld [vmem:[#allocation5 + $0x8] sm:$0xff] }
 0x26a   : > { %v959_v44 = vpop.f32.mrf.mxu0  ;;  %v1049_v19 = vadd.f32 %v1048_v39, %v861_v13 }
 0x26b   : > { %v1052_v45 = vpop.f32.mrf.mxu1  ;;  %v960_v26 = vadd.f32 %v959_v44, %v861_v13  ;;  %v1085_v44 = vld [vmem:[#allocation5] sm:$0xff] }
 0x26c   : > { %v963_v47 = vpop.f32.mrf.mxu0  ;;  %v1053_v15 = vadd.f32 %v1052_v45, %v866_v43  ;;  %v1072_v39 = vmax.f32 %v1049_v19, 0.0 }
 0x26d   : > { %v1054_v51 = vpop.f32.mrf.mxu1  ;;  %v964_v14 = vadd.f32 %v963_v47, %v866_v43  ;;  %v1070_v36 = vmax.f32 %v960_v26, 0.0 }
 0x26e   : > { %v965_v53 = vpop.f32.mrf.mxu0  ;;  %v1055_v10 = vadd.f32 %v1054_v51, %v866_v43  ;;  %v1075_v45 = vmax.f32 %v1053_v15, 0.0 }
 0x26f   : > { %v1058_v56 = vpop.f32.mrf.mxu1  ;;  %v966_v16 = vadd.f32 %v965_v53, %v866_v43  ;;  %v1073_v47 = vmax.f32 %v964_v14, 0.0  ;;  %v1071_v53 = vmax.f32 %v1047_v23, 0.0 }
 0x270   : > { %v969_v57 = vpop.f32.mrf.mxu0  ;;  %v1059_v7 = vadd.f32 %v1058_v56, %v871_v0  ;;  %v1076_v31 = vmax.f32 %v1055_v10, 0.0  ;;  %v1069_v56 = vmax.f32 %v958_v30, 0.0 }
 0x271   : > { %v1060_v62 = vpop.f32.mrf.mxu1  ;;  %v970_v11 = vadd.f32 %v969_v57, %v871_v0  ;;  %v1074_v51 = vmax.f32 %v966_v16, 0.0  ;;  %v1087_v57 = vld [vmem:[#allocation5 + $0x10] sm:$0xff] }
 0x272   : > { %v971_v63 = vpop.f32.mrf.mxu0  ;;  %v1061_v5 = vadd.f32 %v1060_v62, %v871_v0  ;;  %v1079_v27 = vmax.f32 %v1059_v7, 0.0  ;;  %v1106_v62 = vpop.permute.xlu1 %1105 }
 0x273   : > { %v1064_v1 = vpop.f32.mrf.mxu1  ;;  %v972_v34 = vadd.f32 %v971_v63, %v871_v0  ;;  %v1077_v35 = vmax.f32 %v970_v11, 0.0  ;;  %v3749_v63 = vpop.permute.xlu0 %1110 }
 0x274   : > { %v975_v2 = vpop.f32.mrf.mxu0  ;;  %v1065_v3 = vadd.f32 %v1064_v1, %v876_v61  ;;  %v1080_v20 = vmax.f32 %v1061_v5, 0.0 }
 0x275   : > { %v1066_v4 = vpop.f32.mrf.mxu1  ;;  %v976_v58 = vadd.f32 %v975_v2, %v876_v61  ;;  %v1078_v28 = vmax.f32 %v972_v34, 0.0 }
 0x276   : > { %v1067_v50 = vadd.f32 %v1066_v4, %v876_v61  ;;  %v977_v6 = vpop.f32.mrf.mxu0  ;;  %v1083_v17 = vmax.f32 %v1065_v3, 0.0  ;;  %v1096_v0 = vpop.permute.xlu1 %1095 }
 0x277   : > { %v978_v9 = vadd.f32 %v977_v6, %v876_v61  ;;  %v1081_v22 = vmax.f32 %v976_v58, 0.0  ;;  %v1088_v61 = vld [vmem:[#allocation5 + $0x18] sm:$0xff]  ;;  %v1101_v11 = vpop.permute.xlu0 %1100 }
 0x278   : > { %v1084_v12 = vmax.f32 %v1067_v50, 0.0 }
 0x279   : > { %v1082_v18 = vmax.f32 %v978_v9, 0.0 }
 0x27a   : > { %1239 = vmatprep.subr.mxu1 %v1084_v12 }
 0x27b   : > { %1150 = vmatprep.subr.mxu0 %v1082_v18  ;;  %1240 = vmatpush1.msra.mxu1 %v1083_v17 }
 0x27c   : > { %1151 = vmatpush1.msra.mxu0 %v1081_v22  ;;  %1241 = vmatprep.subr.mxu1 %v1080_v20 }
 0x27d   : > { %1152 = vmatprep.subr.mxu0 %v1078_v28  ;;  %1242 = vmatpush1.msra.mxu1 %v1079_v27 }
 0x27e   : > { %1153 = vmatpush1.msra.mxu0 %v1077_v35  ;;  %1243 = vmatprep.subr.mxu1 %v1076_v31 }
 0x27f   : > { %1154 = vmatprep.subr.mxu0 %v1074_v51  ;;  %1244 = vmatpush1.msra.mxu1 %v1075_v45 }
 0x280   : > { %1155 = vmatpush1.msra.mxu0 %v1073_v47  ;;  %1245 = vmatprep.subr.mxu1 %v1072_v39 }
 0x281   : > { %1156 = vmatprep.subr.mxu0 %v1070_v36  ;;  %1246 = vmatpush1.msra.mxu1 %v1071_v53 }
 0x282   : > { %1157 = vmatpush1.msra.mxu0 %v1069_v56  ;;  %2990 = vmatmul.mubr.msk.f32.vlgmr.msra.gmra.mxu1 %vm1113_vm5, %v1085_v44 }
 0x283   : > { %2986 = vmatmul.mubr.msk.f32.vlgmr.msra.gmra.mxu0 %vm1113_vm5, %v1085_v44  ;;  %1285 = vmatprep.mubr.f32.mxu1 %v3267_v8 }
 0x284   : > { %1196 = vmatprep.mubr.f32.mxu0 %v3267_v8 }
 0x286   : > { %2991 = vmatmul.mubr.msk.f32.gmra.mxu1 %vm1113_vm5, %v1086_v38 }
 0x287   : > { %2987 = vmatmul.mubr.msk.f32.gmra.mxu0 %vm1113_vm5, %v1086_v38  ;;  %1291 = vmatprep.mubr.f32.mxu1 %v3267_v8  ;;  %v2998_v38 = vld [vmem:[%s4440_s4 + $0x20] sm:$0xff] }
 0x288   : > { %1202 = vmatprep.mubr.f32.mxu0 %v3267_v8 }
 0x28a   : > { %2992 = vmatmul.mubr.msk.f32.gmra.mxu1 %vm1113_vm5, %v1087_v57 }
 0x28b   : > { %2988 = vmatmul.mubr.msk.f32.gmra.mxu0 %vm1113_vm5, %v1087_v57  ;;  %1297 = vmatprep.mubr.f32.mxu1 %v3267_v8  ;;  %v2999_v57 = vld [vmem:[%s4440_s4 + $0x28] sm:$0xff] }
 0x28c   : > { %1208 = vmatprep.mubr.f32.mxu0 %v3267_v8 }
 0x28e   : > { %2993 = vmatmul.mubr.msk.f32.gmra.mxu1 %vm1113_vm5, %v1088_v61 }
 0x28f   : > { %2989 = vmatmul.mubr.msk.f32.gmra.mxu0 %vm1113_vm5, %v1088_v61  ;;  %1725 = vmatprep.mubr.f32.mxu1 %v3267_v8  ;;  %v3012_v61 = vld [vmem:[%s4442_s6 + $0x30] sm:$0xff] }
 0x290   : > { %1636 = vmatprep.mubr.f32.mxu0 %v3267_v8 }
 0x342   : > { %v1281_v1 = vpop.f32.mrf.mxu1 }
 0x343   : > { %v1282_v2 = vadd.f32 %v1281_v1, %v1096_v0  ;;  %v1192_v3 = vpop.f32.mrf.mxu0 }
 0x344   : > { %v1193_v4 = vadd.f32 %v1192_v3, %v1096_v0  ;;  %v1283_v5 = vpop.f32.mrf.mxu1 }
 0x345   : > { %v3752_v58 = vadd.f32 %v1282_v2, %v3457_v25  ;;  %v1284_v50 = vadd.f32 %v1283_v5, %v1096_v0  ;;  %v1194_v6 = vpop.f32.mrf.mxu0 }
 0x346   : > { %v3755_v43 = vadd.f32 %v1193_v4, %v3455_v24  ;;  %v1195_v7 = vadd.f32 %v1194_v6, %v1096_v0  ;;  %v1287_v34 = vpop.f32.mrf.mxu1  ;;  %v3011_v0 = vld [vmem:[%s4442_s6 + $0x28] sm:$0xff] }
 0x347   : > { %v3758_v9 = vadd.f32 %v1284_v50, %v3482_v40  ;;  %v1198_v10 = vpop.f32.mrf.mxu0  ;;  %1433 = vrot.lane.b32.xlu1 %v3752_v58, %s3271_s28  ;;  %v1288_v25 = vadd.f32 %v1287_v34, %v1101_v11 }
 0x348   : > { %v1289_v12 = vpop.f32.mrf.mxu1  ;;  %1417 = vrot.lane.b32.xlu0 %v3755_v43, %s3271_s28  ;;  %v3770_v13 = vadd.f32 %v1195_v7, %v3466_v32  ;;  %v1199_v40 = vadd.f32 %v1198_v10, %v1101_v11 }
 0x349   : > { %v3767_v24 = vsel %vm400_vm1, %v3758_v9, 0.0  ;;  %v1290_v15 = vadd.f32 %v1289_v12, %v1101_v11  ;;  %v1200_v16 = vpop.f32.mrf.mxu0  ;;  %v3777_v18 = vadd.f32 %v1288_v25, %v3468_v33 }
 0x34a   : > { %v1293_v17 = vpop.f32.mrf.mxu1  ;;  %v3780_v19 = vadd.f32 %v1199_v40, %v3488_v41  ;;  %v1201_v32 = vadd.f32 %v1200_v16, %v1101_v11 }
 0x34b   : > { %1441 = vrot.lane.b32.xlu1 %v3767_v24, %s3271_s28  ;;  %v3783_v14 = vadd.f32 %v1290_v15, %v3501_v46  ;;  %v1204_v20 = vpop.f32.mrf.mxu0  ;;  %v1294_v23 = vadd.f32 %v1293_v17, %v1106_v62 }
 0x34c   : > { %1425 = vrot.lane.b32.xlu0 %v3770_v13, %s3271_s28  ;;  %v1295_v22 = vpop.f32.mrf.mxu1  ;;  %v3790_v26 = vadd.f32 %v1201_v32, %v3477_v37  ;;  %v1205_v33 = vadd.f32 %v1204_v20, %v1106_v62 }
 0x34d   : > { %v1296_v27 = vadd.f32 %v1295_v22, %v1106_v62  ;;  %v3795_v41 = vsel %vm400_vm1, %v3783_v14, 0.0  ;;  %v1206_v46 = vpop.f32.mrf.mxu0  ;;  %v3802_v28 = vadd.f32 %v1294_v23, %v3490_v42 }
 0x34e   : > { %v3805_v37 = vadd.f32 %v1205_v33, %v3507_v48  ;;  %v1207_v31 = vadd.f32 %v1206_v46, %v1106_v62  ;;  %v1299_v35 = vpop.f32.mrf.mxu1  ;;  %v3013_v62 = vld [vmem:[%s4442_s6 + $0x38] sm:$0xff] }
 0x34f   : > { %1435 = vrot.lane.b32.xlu1 %v3777_v18, %s3271_s28  ;;  %v3808_v30 = vadd.f32 %v1296_v27, %v3522_v54  ;;  %v1210_v45 = vpop.f32.mrf.mxu0  ;;  %v1300_v51 = vadd.f32 %v1299_v35, %v3749_v63 }
 0x350   : > { %1419 = vrot.lane.b32.xlu0 %v3780_v19, %s3271_s28  ;;  %v3816_v42 = vadd.f32 %v1207_v31, %v3509_v49  ;;  %v1211_v48 = vadd.f32 %v1210_v45, %v3749_v63  ;;  %v1301_v53 = vpop.f32.mrf.mxu1 }
 0x351   : > { %v3822_v54 = vsel %vm400_vm1, %v3808_v30, 0.0  ;;  %v3829_v39 = vadd.f32 %v1300_v51, %v3528_v55  ;;  %v1212_v49 = vpop.f32.mrf.mxu0  ;;  %v1302_v44 = vadd.f32 %v1301_v53, %v3749_v63 }
 0x352   : > { %v3832_v47 = vadd.f32 %v1211_v48, %v3517_v52  ;;  %v1213_v36 = vadd.f32 %v1212_v49, %v3749_v63  ;;  %v3010_v63 = vld [vmem:[%s4442_s6 + $0x20] sm:$0xff] }
 0x353   : > { %1443 = vrot.lane.b32.xlu1 %v3795_v41, %s3271_s28  ;;  %v3846_v55 = vadd.f32 %v1302_v44, %v3545_v60  ;;  %v3001_v60 = vld [vmem:[%s4440_s4 + $0x38] sm:$0xff] }
 0x354   : > { %1427 = vrot.lane.b32.xlu0 %v3790_v26, %s3271_s28  ;;  %v3843_v52 = vadd.f32 %v1213_v36, %v3540_v59  ;;  %v3000_v59 = vld [vmem:[%s4440_s4 + $0x30] sm:$0xff] }
 0x355   : > { %v3853_v56 = vsel %vm400_vm1, %v3846_v55, 0.0 }
 0x357   : > { %1437 = vrot.lane.b32.xlu1 %v3802_v28, %s3271_s28 }
 0x358   : > { %1421 = vrot.lane.b32.xlu0 %v3805_v37, %s3271_s28 }
 0x35b   : > { %1445 = vrot.lane.b32.xlu1 %v3822_v54, %s3271_s28 }
 0x35c   : > { %1429 = vrot.lane.b32.xlu0 %v3816_v42, %s3271_s28 }
 0x35f   : > { %1439 = vrot.lane.b32.xlu1 %v3829_v39, %s3271_s28 }
 0x360   : > { %1423 = vrot.lane.b32.xlu0 %v3832_v47, %s3271_s28 }
 0x363   : > { %1364 = vrot.lane.b32.xlu1 %v3822_v54, %s3272_s29 }
 0x364   : > { %1342 = vrot.lane.b32.xlu0 %v3832_v47, %s3272_s29 }
 0x367   : > { %1350 = vrot.lane.b32.xlu1 %v3843_v52, %s3272_s29 }
 0x368   : > { %1358 = vrot.lane.b32.xlu0 %v3829_v39, %s3272_s29 }
 0x36b   : > { %1447 = vrot.lane.b32.xlu1 %v3853_v56, %s3271_s28 }
 0x36c   : > { %1431 = vrot.lane.b32.xlu0 %v3843_v52, %s3271_s28 }
 0x36f   : > { %1348 = vrot.lane.b32.xlu1 %v3816_v42, %s3272_s29 }
 0x370   : > { %1356 = vrot.lane.b32.xlu0 %v3802_v28, %s3272_s29 }
 0x373   : > { %1362 = vrot.lane.b32.xlu1 %v3795_v41, %s3272_s29 }
 0x374   : > { %1340 = vrot.lane.b32.xlu0 %v3805_v37, %s3272_s29 }
 0x377   : > { %1346 = vrot.lane.b32.xlu1 %v3790_v26, %s3272_s29 }
 0x378   : > { %1354 = vrot.lane.b32.xlu0 %v3777_v18, %s3272_s29 }
 0x37b   : > { %1366 = vrot.lane.b32.xlu1 %v3853_v56, %s3272_s29 }
 0x37c   : > { %1338 = vrot.lane.b32.xlu0 %v3780_v19, %s3272_s29 }
 0x37f   : > { %1360 = vrot.lane.b32.xlu1 %v3767_v24, %s3272_s29 }
 0x380   : > { %1352 = vrot.lane.b32.xlu0 %v3752_v58, %s3272_s29 }
 0x383   : > { %1344 = vrot.lane.b32.xlu1 %v3770_v13, %s3272_s29 }
 0x384   : > { %1336 = vrot.lane.b32.xlu0 %v3755_v43, %s3272_s29  ;;  %s2857_s29 = scalar_lea.sflag [#allocation7], %s311_s18 }
 0x387   : > { %1552 = vperm.xlu1 %3153, %v3000_v59  }
 0x388   : > { %1557 = vperm.xlu0 %3152, %v3001_v60  }
 0x38b   : > { %1542 = vperm.xlu1 %3153, %v2998_v38  }
 0x38c   : > { %1547 = vperm.xlu0 %3152, %v2999_v57  }
 0x38f   : > { %1788 = vperm.xlu1 %3153, %v3012_v61  }
 0x390   : > { %1793 = vperm.xlu0 %3152, %v3013_v62  }
 0x393   : > { %1778 = vperm.xlu1 %3153, %v3010_v63  }
 0x394   : > { %1783 = vperm.xlu0 %3152, %v3011_v0  }
 0x3b9   : > { %v1434_v1 = vpop.permute.xlu1 %1433 }
 0x3ba   : > { %v1418_v2 = vpop.permute.xlu0 %1417 }
 0x3bd   : > { %v1442_v3 = vpop.permute.xlu1 %1441 }
 0x3be   : > { %v1426_v4 = vpop.permute.xlu0 %1425  ;;  %v1462_v60 = vsel %vm1449_vm6, %v1442_v3, %v1418_v2  ;;  %v1450_v38 = vsel %vm1449_vm6, %v1434_v1, %v1442_v3 }
 0x3bf   : > { %v1454_v61 = vsel %vm1449_vm6, %v1426_v4, %v1434_v1  ;;  %v1458_v62 = vsel %vm1449_vm6, %v1418_v2, %v1426_v4 }
 0x3c1   : > { %v1436_v5 = vpop.permute.xlu1 %1435 }
 0x3c2   : > { %v1420_v50 = vpop.permute.xlu0 %1419 }
 0x3c5   : > { %v1444_v6 = vpop.permute.xlu1 %1443 }
 0x3c6   : > { %v1428_v7 = vpop.permute.xlu0 %1427  ;;  %v1463_v53 = vsel %vm1449_vm6, %v1444_v6, %v1420_v50  ;;  %v1451_v36 = vsel %vm1449_vm6, %v1436_v5, %v1444_v6 }
 0x3c7   : > { %v1455_v44 = vsel %vm1449_vm6, %v1428_v7, %v1436_v5  ;;  %v1459_v59 = vsel %vm1449_vm6, %v1420_v50, %v1428_v7 }
 0x3c9   : > { %v1438_v34 = vpop.permute.xlu1 %1437 }
 0x3ca   : > { %v1422_v10 = vpop.permute.xlu0 %1421 }
 0x3cd   : > { %v1446_v11 = vpop.permute.xlu1 %1445 }
 0x3ce   : > { %v1430_v12 = vpop.permute.xlu0 %1429  ;;  %v1464_v31 = vsel %vm1449_vm6, %v1446_v11, %v1422_v10  ;;  %v1452_v35 = vsel %vm1449_vm6, %v1438_v34, %v1446_v11 }
 0x3cf   : > { %v1456_v51 = vsel %vm1449_vm6, %v1430_v12, %v1438_v34  ;;  %v1460_v48 = vsel %vm1449_vm6, %v1422_v10, %v1430_v12 }
 0x3d1   : > { %v1440_v25 = vpop.permute.xlu1 %1439 }
 0x3d2   : > { %v1424_v40 = vpop.permute.xlu0 %1423 }
 0x3d5   : > { %v3895_v15 = vpop.permute.xlu1 %1364 }
 0x3d6   : > { %v3897_v16 = vpop.permute.xlu0 %1342 }
 0x3d9   : > { %v3899_v17 = vpop.permute.xlu1 %1350 }
 0x3da   : > { %v1359_v32 = vpop.permute.xlu0 %1358 }
 0x3db   : > { %v1376_v2 = vsel %vm1368_vm7, %v3899_v17, %v1359_v32 }
 0x3dd   : > { %v1448_v20 = vpop.permute.xlu1 %1447 }
 0x3de   : > { %v1453_v22 = vsel %vm1449_vm6, %v1440_v25, %v1448_v20  ;;  %v1432_v23 = vpop.permute.xlu0 %1431  ;;  %v1465_v33 = vsel %vm1449_vm6, %v1448_v20, %v1424_v40 }
 0x3df   : > { %v1461_v27 = vsel %vm1449_vm6, %v1424_v40, %v1432_v23  ;;  %1669 = vmatprep.subr.mxu1 %v1465_v33  ;;  %v1457_v46 = vsel %vm1449_vm6, %v1432_v23, %v1440_v25  ;;  %v2995_v23 = vld [vmem:[%s4439_s3 + $0x28] sm:$0xff]  ;;  %v2996_v33 = vld [vmem:[%s4439_s3 + $0x30] sm:$0xff] }
 0x3e0   : > { %1580 = vmatprep.subr.mxu0 %v1457_v46  ;;  %1670 = vmatpush1.msra.mxu1 %v1453_v22 }
 0x3e1   : > { %v1349_v45 = vpop.permute.xlu1 %1348  ;;  %1581 = vmatpush1.msra.mxu0 %v1461_v27  ;;  %1671 = vmatprep.subr.mxu1 %v1464_v31  ;;  %v2997_v27 = vld [vmem:[%s4439_s3 + $0x38] sm:$0xff] }
 0x3e2   : > { %1582 = vmatprep.subr.mxu0 %v1456_v51  ;;  %1672 = vmatpush1.msra.mxu1 %v1452_v35  ;;  %v1357_v49 = vpop.permute.xlu0 %1356 }
 0x3e3   : > { %1583 = vmatpush1.msra.mxu0 %v1460_v48  ;;  %1673 = vmatprep.subr.mxu1 %v1463_v53  ;;  %v1371_v4 = vsel %vm1368_vm7, %v1357_v49, %v3895_v15  ;;  %v1375_v5 = vsel %vm1368_vm7, %v1349_v45, %v1357_v49 }
 0x3e4   : > { %1584 = vmatprep.subr.mxu0 %v1455_v44  ;;  %1674 = vmatpush1.msra.mxu1 %v1451_v36 }
 0x3e5   : > { %v1363_v57 = vpop.permute.xlu1 %1362  ;;  %1585 = vmatpush1.msra.mxu0 %v1459_v59  ;;  %1675 = vmatprep.subr.mxu1 %v1462_v60 }
 0x3e6   : > { %1586 = vmatprep.subr.mxu0 %v1454_v61  ;;  %1676 = vmatpush1.msra.mxu1 %v1450_v38  ;;  %v1341_v63 = vpop.permute.xlu0 %1340 }
 0x3e7   : > { %1587 = vmatpush1.msra.mxu0 %v1458_v62  ;;  %3068 = vmatprep.subr.msk.mxu1 %vm400_vm1, %v3846_v55  ;;  %v1379_v6 = vsel %vm1368_vm7, %v1341_v63, %v1349_v45  ;;  %v1383_v7 = vsel %vm1368_vm7, %v3895_v15, %v1341_v63 }
 0x3e8   : > { %1588 = vmatprep.subr.mxu0 %v3843_v52  ;;  %1678 = vmatpush1.msra.mxu1 %v3829_v39 }
 0x3e9   : > { %v1347_v0 = vpop.permute.xlu1 %1346  ;;  %1589 = vmatpush1.msra.mxu0 %v3832_v47  ;;  %3069 = vmatprep.subr.msk.mxu1 %vm400_vm1, %v3808_v30 }
 0x3ea   : > { %1590 = vmatprep.subr.mxu0 %v3816_v42  ;;  %1680 = vmatpush1.msra.mxu1 %v3802_v28  ;;  %v1355_v1 = vpop.permute.xlu0 %1354 }
 0x3eb   : > { %1591 = vmatpush1.msra.mxu0 %v3805_v37  ;;  %3070 = vmatprep.subr.msk.mxu1 %vm400_vm1, %v3783_v14  ;;  %v1370_v10 = vsel %vm1368_vm7, %v1355_v1, %v1363_v57  ;;  %v1374_v11 = vsel %vm1368_vm7, %v1347_v0, %v1355_v1 }
 0x3ec   : > { %1592 = vmatprep.subr.mxu0 %v3790_v26  ;;  %1682 = vmatpush1.msra.mxu1 %v3777_v18 }
 0x3ed   : > { %v1367_v55 = vpop.permute.xlu1 %1366  ;;  %1593 = vmatpush1.msra.mxu0 %v3780_v19  ;;  %3071 = vmatprep.subr.msk.mxu1 %vm400_vm1, %v3758_v9  ;;  %v1380_v9 = vsel %vm1368_vm7, %v3897_v16, %v3899_v17 }
 0x3ee   : > { %1594 = vmatprep.subr.mxu0 %v3770_v13  ;;  %1684 = vmatpush1.msra.mxu1 %v3752_v58  ;;  %v1339_v30 = vpop.permute.xlu0 %1338  ;;  %v1372_v14 = vsel %vm1368_vm7, %v1359_v32, %v1367_v55  ;;  %v1384_v3 = vsel %vm1368_vm7, %v1367_v55, %v3897_v16  ;;  %v2994_v16 = vld [vmem:[%s4439_s3 + $0x20] sm:$0xff] }
 0x3ef   : > { %1595 = vmatpush1.msra.mxu0 %v3755_v43  ;;  %1685 = vmatprep.subr.mxu1 %v1372_v14  ;;  %v1378_v12 = vsel %vm1368_vm7, %v1339_v30, %v1347_v0  ;;  %v1382_v40 = vsel %vm1368_vm7, %v1363_v57, %v1339_v30 }
 0x3f0   : > { %1596 = vmatprep.subr.mxu0 %v1380_v9  ;;  %1686 = vmatpush1.msra.mxu1 %v1376_v2 }
 0x3f1   : > { %v1361_v50 = vpop.permute.xlu1 %1360  ;;  %1597 = vmatpush1.msra.mxu0 %v1384_v3  ;;  %1687 = vmatprep.subr.mxu1 %v1371_v4 }
 0x3f2   : > { %1598 = vmatprep.subr.mxu0 %v1379_v6  ;;  %1688 = vmatpush1.msra.mxu1 %v1375_v5  ;;  %v1353_v34 = vpop.permute.xlu0 %1352 }
 0x3f3   : > { %1599 = vmatpush1.msra.mxu0 %v1383_v7  ;;  %1689 = vmatprep.subr.mxu1 %v1370_v10  ;;  %v1369_v25 = vsel %vm1368_vm7, %v1353_v34, %v1361_v50 }
 0x3f4   : > { %1600 = vmatprep.subr.mxu0 %v1378_v12  ;;  %1690 = vmatpush1.msra.mxu1 %v1374_v11 }
 0x3f5   : > { %v1345_v15 = vpop.permute.xlu1 %1344  ;;  %1601 = vmatpush1.msra.mxu0 %v1382_v40  ;;  %1691 = vmatprep.subr.mxu1 %v1369_v25 }
 0x3f6   : > { %v1373_v17 = vsel %vm1368_vm7, %v1345_v15, %v1353_v34  ;;  %v1337_v32 = vpop.permute.xlu0 %1336 }
 0x3f7   : > { %v1381_v20 = vsel %vm1368_vm7, %v1361_v50, %v1337_v32  ;;  %1692 = vmatpush1.msra.mxu1 %v1373_v17  ;;  %v1377_v22 = vsel %vm1368_vm7, %v1337_v32, %v1345_v15 }
 0x3f8   : > { %1602 = vmatprep.subr.mxu0 %v1377_v22  ;;  %3006 = vmatmul.mubr.msk.f32.vlgmr.msra.gmra.mxu1 %vm878_vm4, %v2994_v16 }
 0x3f9   : > { %1603 = vmatpush1.msra.mxu0 %v1381_v20  ;;  %1731 = vmatprep.mubr.f32.mxu1 %v3267_v8 }
 0x3fa   : > { %3002 = vmatmul.mubr.msk.f32.vlgmr.msra.gmra.mxu0 %vm878_vm4, %v2994_v16 }
 0x3fb   : > { %1642 = vmatprep.mubr.f32.mxu0 %v3267_v8 }
 0x3fc   : > { %3007 = vmatmul.mubr.msk.f32.gmra.mxu1 %vm878_vm4, %v2995_v23 }
 0x3fd   : > { %1737 = vmatprep.mubr.f32.mxu1 %v3267_v8 }
 0x3fe   : > { %3003 = vmatmul.mubr.msk.f32.gmra.mxu0 %vm878_vm4, %v2995_v23 }
 0x3ff   : > { %1648 = vmatprep.mubr.f32.mxu0 %v3267_v8 }
 0x400   : > { %3008 = vmatmul.mubr.msk.f32.gmra.mxu1 %vm878_vm4, %v2996_v33 }
 0x401   : > { %1743 = vmatprep.mubr.f32.mxu1 %v3267_v8 }
 0x402   : > { %3004 = vmatmul.mubr.msk.f32.gmra.mxu0 %vm878_vm4, %v2996_v33  ;;  %v1553_v38 = vpop.permute.xlu1 %1552 }
 0x403   : > { %1654 = vmatprep.mubr.f32.mxu0 %v3267_v8  ;;  %v1558_v44 = vpop.permute.xlu0 %1557 }
 0x404   : > { %3009 = vmatmul.mubr.msk.f32.gmra.mxu1 %vm878_vm4, %v2997_v27 }
 0x405   : > { %1961 = vmatprep.mubr.f32.mxu1 %v3267_v8 }
 0x406   : > { %3005 = vmatmul.mubr.msk.f32.gmra.mxu0 %vm878_vm4, %v2997_v27  ;;  %v1543_v6 = vpop.permute.xlu1 %1542 }
 0x407   : > { %1872 = vmatprep.mubr.f32.mxu0 %v3267_v8  ;;  %v1548_v30 = vpop.permute.xlu0 %1547 }
 0x4b8   : > { %v1727_v46 = vpop.f32.mrf.mxu1 }
 0x4b9   : > { %v1728_v15 = vadd.f32 %v1727_v46, %v1543_v6 }
 0x4ba   : > { %v1638_v31 = vpop.f32.mrf.mxu0  ;;  %v1729_v35 = vpop.f32.mrf.mxu1 }
 0x4bb   : > { %v1730_v11 = vadd.f32 %v1729_v35, %v1543_v6  ;;  %v1639_v33 = vadd.f32 %v1638_v31, %v1543_v6  ;;  %v1768_v31 = vld [vmem:[#allocation5 + $0x28] sm:$0xff] }
 0x4bc   : > { %v1640_v45 = vpop.f32.mrf.mxu0  ;;  %v1733_v51 = vpop.f32.mrf.mxu1 }
 0x4bd   : > { %v1734_v7 = vadd.f32 %v1733_v51, %v1548_v30  ;;  %v1641_v20 = vadd.f32 %v1640_v45, %v1543_v6  ;;  %v1753_v35 = vmax.f32 %v1730_v11, 0.0  ;;  %v1750_v45 = vmax.f32 %v1639_v33, 0.0 }
 0x4be   : > { %v1644_v48 = vpop.f32.mrf.mxu0  ;;  %v1735_v49 = vpop.f32.mrf.mxu1 }
 0x4bf   : > { %v1736_v3 = vadd.f32 %v1735_v49, %v1548_v30  ;;  %v1645_v16 = vadd.f32 %v1644_v48, %v1548_v30  ;;  %v1756_v27 = vmax.f32 %v1734_v7, 0.0  ;;  %v1767_v48 = vld [vmem:[#allocation5 + $0x20] sm:$0xff] }
 0x4c0   : > { %v1646_v53 = vpop.f32.mrf.mxu0  ;;  %v1739_v36 = vpop.f32.mrf.mxu1 }
 0x4c1   : > { %v1740_v14 = vadd.f32 %v1739_v36, %v1553_v38  ;;  %v1647_v12 = vadd.f32 %v1646_v53, %v1548_v30  ;;  %v1757_v22 = vmax.f32 %v1736_v3, 0.0  ;;  %v1752_v53 = vmax.f32 %v1728_v15, 0.0 }
 0x4c2   : > { %v1650_v59 = vpop.f32.mrf.mxu0  ;;  %v1741_v60 = vpop.f32.mrf.mxu1  ;;  %v1754_v46 = vmax.f32 %v1645_v16, 0.0  ;;  %v1751_v36 = vmax.f32 %v1641_v20, 0.0 }
 0x4c3   : > { %v1742_v1 = vadd.f32 %v1741_v60, %v1553_v38  ;;  %v1651_v34 = vadd.f32 %v1650_v59, %v1553_v38  ;;  %v1760_v17 = vmax.f32 %v1740_v14, 0.0  ;;  %v1755_v49 = vmax.f32 %v1647_v12, 0.0  ;;  %v1770_v59 = vld [vmem:[#allocation5 + $0x38] sm:$0xff]  ;;  %v1789_v60 = vpop.permute.xlu1 %1788 }
 0x4c4   : > { %v1652_v57 = vpop.f32.mrf.mxu0  ;;  %v1745_v61 = vpop.f32.mrf.mxu1 }
 0x4c5   : > { %v1746_v62 = vadd.f32 %v1745_v61, %v1558_v44  ;;  %v1653_v4 = vadd.f32 %v1652_v57, %v1553_v38  ;;  %v1761_v25 = vmax.f32 %v1742_v1, 0.0  ;;  %v1758_v51 = vmax.f32 %v1651_v34, 0.0  ;;  %v4041_v57 = vpop.permute.xlu0 %1793 }
 0x4c6   : > { %v1656_v63 = vpop.f32.mrf.mxu0  ;;  %v1747_v0 = vpop.f32.mrf.mxu1 }
 0x4c7   : > { %v1748_v55 = vadd.f32 %v1747_v0, %v1558_v44  ;;  %v1657_v2 = vadd.f32 %v1656_v63, %v1558_v44  ;;  %v1764_v10 = vmax.f32 %v1746_v62, 0.0  ;;  %v1759_v23 = vmax.f32 %v1653_v4, 0.0  ;;  %v1779_v61 = vpop.permute.xlu1 %1778 }
 0x4c8   : > { %v1658_v9 = vpop.f32.mrf.mxu0 }
 0x4c9   : > { %v1765_v5 = vmax.f32 %v1748_v55, 0.0  ;;  %v1659_v50 = vadd.f32 %v1658_v9, %v1558_v44  ;;  %v1762_v32 = vmax.f32 %v1657_v2, 0.0  ;;  %v1769_v44 = vld [vmem:[#allocation5 + $0x30] sm:$0xff] }
 0x4cb   : > { %v1763_v40 = vmax.f32 %v1659_v50, 0.0  ;;  %1921 = vmatprep.subr.mxu1 %v1765_v5  ;;  %v1784_v5 = vpop.permute.xlu0 %1783 }
 0x4cc   : > { %1922 = vmatpush1.msra.mxu1 %v1764_v10 }
 0x4cd   : > { %1832 = vmatprep.subr.mxu0 %v1763_v40  ;;  %1923 = vmatprep.subr.mxu1 %v1761_v25 }
 0x4ce   : > { %1833 = vmatpush1.msra.mxu0 %v1762_v32  ;;  %1924 = vmatpush1.msra.mxu1 %v1760_v17 }
 0x4cf   : > { %1834 = vmatprep.subr.mxu0 %v1759_v23  ;;  %1925 = vmatprep.subr.mxu1 %v1757_v22 }
 0x4d0   : > { %1835 = vmatpush1.msra.mxu0 %v1758_v51  ;;  %1926 = vmatpush1.msra.mxu1 %v1756_v27 }
 0x4d1   : > { %1836 = vmatprep.subr.mxu0 %v1755_v49  ;;  %1927 = vmatprep.subr.mxu1 %v1753_v35 }
 0x4d2   : > { %1837 = vmatpush1.msra.mxu0 %v1754_v46  ;;  %1928 = vmatpush1.msra.mxu1 %v1752_v53 }
 0x4d3   : > { %1838 = vmatprep.subr.mxu0 %v1751_v36  ;;  %3018 = vmatmul.mubr.msk.f32.vlgmr.msra.gmra.mxu1 %vm1113_vm5, %v1767_v48 }
 0x4d4   : > { %1839 = vmatpush1.msra.mxu0 %v1750_v45  ;;  %1967 = vmatprep.mubr.f32.mxu1 %v3267_v8 }
 0x4d5   : > { %3014 = vmatmul.mubr.msk.f32.vlgmr.msra.gmra.mxu0 %vm1113_vm5, %v1767_v48 }
 0x4d6   : > { %1878 = vmatprep.mubr.f32.mxu0 %v3267_v8 }
 0x4d7   : > { %3019 = vmatmul.mubr.msk.f32.gmra.mxu1 %vm1113_vm5, %v1768_v31 }
 0x4d8   : > { %1973 = vmatprep.mubr.f32.mxu1 %v3267_v8 }
 0x4d9   : > { %3015 = vmatmul.mubr.msk.f32.gmra.mxu0 %vm1113_vm5, %v1768_v31  ;;  %v3027_v31 = vld [vmem:[%s4440_s4 + $0x48] sm:$0xff] }
 0x4da   : > { %1884 = vmatprep.mubr.f32.mxu0 %v3267_v8 }
 0x4db   : > { %3020 = vmatmul.mubr.msk.f32.gmra.mxu1 %vm1113_vm5, %v1769_v44 }
 0x4dc   : > { %1979 = vmatprep.mubr.f32.mxu1 %v3267_v8 }
 0x4dd   : > { %3016 = vmatmul.mubr.msk.f32.gmra.mxu0 %vm1113_vm5, %v1769_v44  ;;  %v3026_v44 = vld [vmem:[%s4440_s4 + $0x40] sm:$0xff] }
 0x4de   : > { %1890 = vmatprep.mubr.f32.mxu0 %v3267_v8 }
 0x4df   : > { %3021 = vmatmul.mubr.msk.f32.gmra.mxu1 %vm1113_vm5, %v1770_v59 }
 0x4e0   : > { %2407 = vmatprep.mubr.f32.mxu1 %v3267_v8 }
 0x4e1   : > { %3017 = vmatmul.mubr.msk.f32.gmra.mxu0 %vm1113_vm5, %v1770_v59  ;;  %v3041_v59 = vld [vmem:[%s4442_s6 + $0x58] sm:$0xff] }
 0x4e2   : > { %2318 = vmatprep.mubr.f32.mxu0 %v3267_v8 }
 0x593   : > { %v1963_v38 = vpop.f32.mrf.mxu1 }
 0x594   : > { %v1964_v30 = vadd.f32 %v1963_v38, %v1779_v61  ;;  %v3039_v38 = vld [vmem:[%s4442_s6 + $0x48] sm:$0xff] }
 0x595   : > { %v1874_v62 = vpop.f32.mrf.mxu0  ;;  %v1965_v63 = vpop.f32.mrf.mxu1 }
 0x596   : > { %v1875_v0 = vadd.f32 %v1874_v62, %v1779_v61  ;;  %v1966_v1 = vadd.f32 %v1965_v63, %v1779_v61  ;;  %v4055_v7 = vadd.f32 %v1964_v30, %v3752_v58 }
 0x597   : > { %v1876_v55 = vpop.f32.mrf.mxu0  ;;  %v1969_v9 = vpop.f32.mrf.mxu1 }
 0x598   : > { %v4044_v14 = vadd.f32 %v1875_v0, %v3755_v43  ;;  %v1877_v2 = vadd.f32 %v1876_v55, %v1779_v61  ;;  %v4052_v50 = vadd.f32 %v1966_v1, %v3767_v24  ;;  %v1970_v12 = vadd.f32 %v1969_v9, %v1784_v5  ;;  %v2701_v61 = vld [vmem:[%s4444_s8] sm:$0xff] }
 0x599   : > { %v1880_v3 = vpop.f32.mrf.mxu0  ;;  %v1971_v34 = vpop.f32.mrf.mxu1 }
 0x59a   : > { %v4047_v4 = vadd.f32 %v1877_v2, %v3770_v13  ;;  %2099 = vrot.lane.b32.xlu0 %v4044_v14, %s3273_s27  ;;  %v1881_v43 = vadd.f32 %v1880_v3, %v1784_v5  ;;  %v1972_v13 = vadd.f32 %v1971_v34, %v1784_v5  ;;  %v4064_v24 = vsel %vm400_vm1, %v4052_v50, 0.0 }
 0x59b   : > { %v1882_v6 = vpop.f32.mrf.mxu0  ;;  %v4080_v16 = vadd.f32 %v1970_v12, %v3777_v18  ;;  %v1975_v17 = vpop.f32.mrf.mxu1 }
 0x59c   : > { %2107 = vrot.lane.b32.xlu1 %v4047_v4, %s3273_s27  ;;  %v1883_v10 = vadd.f32 %v1882_v6, %v1784_v5  ;;  %v4067_v58 = vadd.f32 %v1881_v43, %v3780_v19  ;;  %v4077_v40 = vadd.f32 %v1972_v13, %v3795_v41  ;;  %v1976_v33 = vadd.f32 %v1975_v17, %v1789_v60 }
 0x59d   : > { %v1886_v11 = vpop.f32.mrf.mxu0  ;;  %v1977_v20 = vpop.f32.mrf.mxu1 }
 0x59e   : > { %2115 = vrot.lane.b32.xlu0 %v4055_v7, %s3273_s27  ;;  %v4072_v25 = vadd.f32 %v1883_v10, %v3790_v26  ;;  %v1887_v32 = vadd.f32 %v1886_v11, %v1789_v60  ;;  %v4089_v26 = vsel %vm400_vm1, %v4077_v40, 0.0  ;;  %v1978_v22 = vadd.f32 %v1977_v20, %v1789_v60 }
 0x59f   : > { %v1888_v15 = vpop.f32.mrf.mxu0  ;;  %v1981_v51 = vpop.f32.mrf.mxu1 }
 0x5a0   : > { %2123 = vrot.lane.b32.xlu1 %v4064_v24, %s3273_s27  ;;  %v1889_v19 = vadd.f32 %v1888_v15, %v1789_v60  ;;  %v4092_v41 = vadd.f32 %v1887_v32, %v3805_v37  ;;  %v4106_v37 = vadd.f32 %v1978_v22, %v3822_v54  ;;  %v1982_v36 = vadd.f32 %v1981_v51, %v4041_v57  ;;  %v3040_v60 = vld [vmem:[%s4442_s6 + $0x50] sm:$0xff] }
 0x5a1   : > { %v1892_v23 = vpop.f32.mrf.mxu0 }
 0x5a2   : > { %2101 = vrot.lane.b32.xlu0 %v4067_v58, %s3273_s27  ;;  %v4097_v18 = vadd.f32 %v1889_v19, %v3816_v42  ;;  %v4109_v42 = vadd.f32 %v1976_v33, %v3802_v28  ;;  %v1893_v35 = vadd.f32 %v1892_v23, %v4041_v57  ;;  %v4120_v54 = vsel %vm400_vm1, %v4106_v37, 0.0  ;;  %v1983_v28 = vpop.f32.mrf.mxu1 }
 0x5a3   : > { %v1894_v27 = vpop.f32.mrf.mxu0  ;;  %v1984_v48 = vadd.f32 %v1983_v28, %v4041_v57  ;;  %v4142_v45 = vadd.f32 %v1982_v36, %v3829_v39  ;;  %v3029_v39 = vld [vmem:[%s4440_s4 + $0x58] sm:$0xff] }
 0x5a4   : > { %2109 = vrot.lane.b32.xlu1 %v4072_v25, %s3273_s27  ;;  %v1895_v49 = vadd.f32 %v1894_v27, %v4041_v57  ;;  %v4123_v53 = vadd.f32 %v1893_v35, %v3832_v47  ;;  %v3038_v57 = vld [vmem:[%s4442_s6 + $0x40] sm:$0xff] }
 0x5a5   : > { %v4139_v47 = vadd.f32 %v1984_v48, %v3853_v56  ;;  %v3028_v56 = vld [vmem:[%s4440_s4 + $0x50] sm:$0xff] }
 0x5a6   : > { %2117 = vrot.lane.b32.xlu0 %v4080_v16, %s3273_s27  ;;  %v4128_v46 = vadd.f32 %v1895_v49, %v3843_v52 }
 0x5a7   : > { %v4151_v52 = vsel %vm400_vm1, %v4139_v47, 0.0 }
 0x5a8   : > { %2125 = vrot.lane.b32.xlu1 %v4089_v26, %s3273_s27 }
 0x5aa   : > { %2103 = vrot.lane.b32.xlu0 %v4092_v41, %s3273_s27 }
 0x5ac   : > { %2111 = vrot.lane.b32.xlu1 %v4097_v18, %s3273_s27 }
 0x5ae   : > { %2022 = vrot.lane.b32.xlu0 %v4092_v41, %s3274_s26 }
 0x5b0   : > { %2030 = vrot.lane.b32.xlu1 %v4097_v18, %s3274_s26 }
 0x5b2   : > { %2119 = vrot.lane.b32.xlu0 %v4109_v42, %s3273_s27 }
 0x5b4   : > { %2127 = vrot.lane.b32.xlu1 %v4120_v54, %s3273_s27 }
 0x5b6   : > { %2105 = vrot.lane.b32.xlu0 %v4123_v53, %s3273_s27 }
 0x5b8   : > { %2113 = vrot.lane.b32.xlu1 %v4128_v46, %s3273_s27 }
 0x5ba   : > { %2024 = vrot.lane.b32.xlu0 %v4123_v53, %s3274_s26 }
 0x5bc   : > { %2032 = vrot.lane.b32.xlu1 %v4128_v46, %s3274_s26 }
 0x5be   : > { %2121 = vrot.lane.b32.xlu0 %v4142_v45, %s3273_s27 }
 0x5c0   : > { %2129 = vrot.lane.b32.xlu1 %v4151_v52, %s3273_s27  ;;  %s3063_s27 = sshll.u32 %s3254_s12, 9  ;;  %s3180_s12 = scalar_lea.vmem %s2874_s17, 512 }
 0x5c1   : > { %s4392_s28 = scalar_lea.hbm %s4445_s9, %s3063_s27  ;;  %p3181_p10 = scmp.ne.s32.totalorder %s2874_s17, %s3180_s12 }
 0x5c2   : > { %2038 = vrot.lane.b32.xlu0 %v4109_v42, %s3274_s26  ;;  %p3188_p0 = scmp.lt.s32.totalorder %s3186_s20, %s3180_s12 }
 0x5c3   : > { %p3182_p11 = pnand %p3181_p10, %p3366_p4 }
 0x5c4   : > { %2046 = vrot.lane.b32.xlu1 %v4120_v54, %s3274_s26  ;;  %p3189_p1 = por %p3188_p0, %p3187_p13 }
 0x5c5   : > { %p3183_p12 = pneg %p3182_p11 }
 0x5c6   : > { %2040 = vrot.lane.b32.xlu0 %v4142_v45, %s3274_s26 }
 0x5c7   : > { %p3190_p2 = pnand %p3189_p1, %p3183_p12 }
 0x5c8   : > { %2028 = vrot.lane.b32.xlu1 %v4072_v25, %s3274_s26 }
 0x5ca   : > { %2020 = vrot.lane.b32.xlu0 %v4067_v58, %s3274_s26 }
 0x5cc   : > { %2044 = vrot.lane.b32.xlu1 %v4089_v26, %s3274_s26 }
 0x5ce   : > { %2036 = vrot.lane.b32.xlu0 %v4080_v16, %s3274_s26 }
 0x5d0   : > { %2048 = vrot.lane.b32.xlu1 %v4151_v52, %s3274_s26 }
 0x5d2   : > { %2018 = vrot.lane.b32.xlu0 %v4044_v14, %s3274_s26 }
 0x5d4   : > { %2026 = vrot.lane.b32.xlu1 %v4047_v4, %s3274_s26 }
 0x5d6   : > { %2034 = vrot.lane.b32.xlu0 %v4055_v7, %s3274_s26 }
 0x5d8   : > { %2042 = vrot.lane.b32.xlu1 %v4064_v24, %s3274_s26 }
 0x5da   : > { %2239 = vperm.xlu0 %3152, %v3029_v39  }
 0x5dc   : > { %2234 = vperm.xlu1 %3153, %v3028_v56  }
 0x5de   : > { %2229 = vperm.xlu0 %3152, %v3027_v31  }
 0x5e0   : > { %2224 = vperm.xlu1 %3153, %v3026_v44  }
 0x5e2   : > { %2475 = vperm.xlu0 %3152, %v3041_v59  }
 0x5e4   : > { %2470 = vperm.xlu1 %3153, %v3040_v60  }
 0x5e6   : > { %2465 = vperm.xlu0 %3152, %v3039_v38  }
 0x5e8   : > { %2460 = vperm.xlu1 %3153, %v3038_v57  }
 0x5ea   : > { %2704 = vperm.xlu0 %3152, %v2701_v61  }
 0x60c   : > { %v2100_v62 = vpop.permute.xlu0 %2099 }
 0x60e   : > { %v2108_v63 = vpop.permute.xlu1 %2107 }
 0x60f   : > { %v2140_v31 = vsel %vm2131_vm8, %v2100_v62, %v2108_v63 }
 0x610   : > { %v2116_v0 = vpop.permute.xlu0 %2115 }
 0x611   : > { %v2136_v39 = vsel %vm2131_vm8, %v2108_v63, %v2116_v0 }
 0x612   : > { %v2124_v1 = vpop.permute.xlu1 %2123 }
 0x613   : > { %v2144_v60 = vsel %vm2131_vm8, %v2124_v1, %v2100_v62  ;;  %v2132_v38 = vsel %vm2131_vm8, %v2116_v0, %v2124_v1 }
 0x614   : > { %v2102_v55 = vpop.permute.xlu0 %2101 }
 0x616   : > { %v2110_v30 = vpop.permute.xlu1 %2109 }
 0x617   : > { %v2141_v28 = vsel %vm2131_vm8, %v2102_v55, %v2110_v30 }
 0x618   : > { %v2118_v2 = vpop.permute.xlu0 %2117 }
 0x619   : > { %v2137_v35 = vsel %vm2131_vm8, %v2110_v30, %v2118_v2 }
 0x61a   : > { %v2126_v9 = vpop.permute.xlu1 %2125 }
 0x61b   : > { %v2145_v56 = vsel %vm2131_vm8, %v2126_v9, %v2102_v55  ;;  %v2133_v44 = vsel %vm2131_vm8, %v2118_v2, %v2126_v9 }
 0x61c   : > { %v2104_v3 = vpop.permute.xlu0 %2103 }
 0x61e   : > { %v2112_v5 = vpop.permute.xlu1 %2111 }
 0x61f   : > { %v2142_v27 = vsel %vm2131_vm8, %v2104_v3, %v2112_v5 }
 0x620   : > { %v4206_v6 = vpop.permute.xlu0 %2022 }
 0x622   : > { %v4208_v43 = vpop.permute.xlu1 %2030 }
 0x624   : > { %v2120_v34 = vpop.permute.xlu0 %2119 }
 0x625   : > { %v2138_v23 = vsel %vm2131_vm8, %v2112_v5, %v2120_v34 }
 0x626   : > { %v2128_v10 = vpop.permute.xlu1 %2127 }
 0x627   : > { %v2146_v49 = vsel %vm2131_vm8, %v2128_v10, %v2104_v3  ;;  %v2134_v48 = vsel %vm2131_vm8, %v2120_v34, %v2128_v10 }
 0x628   : > { %v2106_v13 = vpop.permute.xlu0 %2105 }
 0x62a   : > { %v2114_v11 = vpop.permute.xlu1 %2113 }
 0x62b   : > { %v2143_v19 = vsel %vm2131_vm8, %v2106_v13, %v2114_v11 }
 0x62c   : > { %v4210_v12 = vpop.permute.xlu0 %2024 }
 0x62e   : > { %v4212_v15 = vpop.permute.xlu1 %2032 }
 0x630   : > { %v2122_v17 = vpop.permute.xlu0 %2121 }
 0x631   : > { %v2139_v32 = vsel %vm2131_vm8, %v2114_v11, %v2122_v17 }
 0x632   : > { %v2130_v20 = vpop.permute.xlu1 %2129  ;;  %2262 = vmatprep.subr.mxu0 %v2139_v32 }
 0x633   : > { %v2135_v22 = vsel %vm2131_vm8, %v2122_v17, %v2130_v20  ;;  %2263 = vmatpush1.msra.mxu0 %v2143_v19  ;;  %v2147_v33 = vsel %vm2131_vm8, %v2130_v20, %v2106_v13  ;;  %v3023_v19 = vld [vmem:[%s4439_s3 + $0x48] sm:$0xff]  ;;  %v3025_v20 = vld [vmem:[%s4439_s3 + $0x58] sm:$0xff] }
 0x634   : > { %2264 = vmatprep.subr.mxu0 %v2138_v23  ;;  %2351 = vmatprep.subr.mxu1 %v2147_v33  ;;  %v2039_v51 = vpop.permute.xlu0 %2038 }
 0x635   : > { %2265 = vmatpush1.msra.mxu0 %v2142_v27  ;;  %2352 = vmatpush1.msra.mxu1 %v2135_v22  ;;  %v2057_v9 = vsel %vm2050_vm9, %v4208_v43, %v2039_v51 }
 0x636   : > { %v2047_v36 = vpop.permute.xlu1 %2046  ;;  %2266 = vmatprep.subr.mxu0 %v2137_v35  ;;  %2353 = vmatprep.subr.mxu1 %v2146_v49 }
 0x637   : > { %2267 = vmatpush1.msra.mxu0 %v2141_v28  ;;  %2354 = vmatpush1.msra.mxu1 %v2134_v48  ;;  %v2065_v30 = vsel %vm2050_vm9, %v2047_v36, %v4206_v6  ;;  %v2053_v2 = vsel %vm2050_vm9, %v2039_v51, %v2047_v36 }
 0x638   : > { %2268 = vmatprep.subr.mxu0 %v2136_v39  ;;  %2355 = vmatprep.subr.mxu1 %v2145_v56  ;;  %v2041_v59 = vpop.permute.xlu0 %2040 }
 0x639   : > { %2269 = vmatpush1.msra.mxu0 %v2140_v31  ;;  %2356 = vmatpush1.msra.mxu1 %v2133_v44  ;;  %v2058_v1 = vsel %vm2050_vm9, %v4212_v15, %v2041_v59 }
 0x63a   : > { %v2029_v57 = vpop.permute.xlu1 %2028  ;;  %2270 = vmatprep.subr.mxu0 %v4128_v46  ;;  %2357 = vmatprep.subr.mxu1 %v2144_v60 }
 0x63b   : > { %2271 = vmatpush1.msra.mxu0 %v4123_v53  ;;  %2358 = vmatpush1.msra.mxu1 %v2132_v38 }
 0x63c   : > { %2272 = vmatprep.subr.mxu0 %v4097_v18  ;;  %3072 = vmatprep.subr.msk.mxu1 %vm400_vm1, %v4139_v47  ;;  %v2021_v61 = vpop.permute.xlu0 %2020 }
 0x63d   : > { %2273 = vmatpush1.msra.mxu0 %v4092_v41  ;;  %2360 = vmatpush1.msra.mxu1 %v4142_v45  ;;  %v2060_v5 = vsel %vm2050_vm9, %v2021_v61, %v2029_v57 }
 0x63e   : > { %v2045_v62 = vpop.permute.xlu1 %2044  ;;  %2274 = vmatprep.subr.mxu0 %v4072_v25  ;;  %3073 = vmatprep.subr.msk.mxu1 %vm400_vm1, %v4106_v37  ;;  %v2062_v37 = vsel %vm2050_vm9, %v4210_v12, %v4212_v15 }
 0x63f   : > { %2275 = vmatpush1.msra.mxu0 %v4067_v58  ;;  %2362 = vmatpush1.msra.mxu1 %v4109_v42  ;;  %v2064_v34 = vsel %vm2050_vm9, %v2045_v62, %v2021_v61 }
 0x640   : > { %2276 = vmatprep.subr.mxu0 %v4047_v4  ;;  %3074 = vmatprep.subr.msk.mxu1 %vm400_vm1, %v4077_v40  ;;  %v2037_v47 = vpop.permute.xlu0 %2036 }
 0x641   : > { %2277 = vmatpush1.msra.mxu0 %v4044_v14  ;;  %2364 = vmatpush1.msra.mxu1 %v4080_v16 }
 0x642   : > { %v2049_v63 = vpop.permute.xlu1 %2048  ;;  %2278 = vmatprep.subr.mxu0 %v2062_v37  ;;  %3075 = vmatprep.subr.msk.mxu1 %vm400_vm1, %v4052_v50  ;;  %v2061_v50 = vsel %vm2050_vm9, %v4206_v6, %v4208_v43  ;;  %v2052_v6 = vsel %vm2050_vm9, %v2037_v47, %v2045_v62  ;;  %v2056_v43 = vsel %vm2050_vm9, %v2029_v57, %v2037_v47 }
 0x643   : > { %v2066_v40 = vsel %vm2050_vm9, %v2049_v63, %v4210_v12  ;;  %2366 = vmatpush1.msra.mxu1 %v4055_v7  ;;  %v2054_v0 = vsel %vm2050_vm9, %v2041_v59, %v2049_v63  ;;  %v3022_v12 = vld [vmem:[%s4439_s3 + $0x40] sm:$0xff] }
 0x644   : > { %2279 = vmatpush1.msra.mxu0 %v2066_v40  ;;  %2367 = vmatprep.subr.mxu1 %v2054_v0  ;;  %v2019_v55 = vpop.permute.xlu0 %2018 }
 0x645   : > { %2280 = vmatprep.subr.mxu0 %v2061_v50  ;;  %2368 = vmatpush1.msra.mxu1 %v2058_v1 }
 0x646   : > { %v2027_v3 = vpop.permute.xlu1 %2026  ;;  %2281 = vmatpush1.msra.mxu0 %v2065_v30  ;;  %2369 = vmatprep.subr.mxu1 %v2053_v2 }
 0x647   : > { %2282 = vmatprep.subr.mxu0 %v2060_v5  ;;  %2370 = vmatpush1.msra.mxu1 %v2057_v9  ;;  %v2059_v10 = vsel %vm2050_vm9, %v2019_v55, %v2027_v3 }
 0x648   : > { %2283 = vmatpush1.msra.mxu0 %v2064_v34  ;;  %2371 = vmatprep.subr.mxu1 %v2052_v6  ;;  %v2035_v13 = vpop.permute.xlu0 %2034 }
 0x649   : > { %2284 = vmatprep.subr.mxu0 %v2059_v10  ;;  %2372 = vmatpush1.msra.mxu1 %v2056_v43  ;;  %v2055_v32 = vsel %vm2050_vm9, %v2027_v3, %v2035_v13 }
 0x64a   : > { %v2043_v11 = vpop.permute.xlu1 %2042 }
 0x64b   : > { %v2063_v15 = vsel %vm2050_vm9, %v2043_v11, %v2019_v55  ;;  %v2051_v17 = vsel %vm2050_vm9, %v2035_v13, %v2043_v11 }
 0x64c   : > { %2285 = vmatpush1.msra.mxu0 %v2063_v15  ;;  %2373 = vmatprep.subr.mxu1 %v2051_v17 }
 0x64d   : > { %3030 = vmatmul.mubr.msk.f32.vlgmr.msra.gmra.mxu0 %vm878_vm4, %v3022_v12  ;;  %2374 = vmatpush1.msra.mxu1 %v2055_v32 }
 0x64e   : > { %3034 = vmatmul.mubr.msk.f32.vlgmr.msra.gmra.mxu1 %vm878_vm4, %v3022_v12  ;;  %2324 = vmatprep.mubr.f32.mxu0 %v3267_v8 }
 0x64f   : > { %2413 = vmatprep.mubr.f32.mxu1 %v3267_v8 }
 0x651   : > { %3031 = vmatmul.mubr.msk.f32.gmra.mxu0 %vm878_vm4, %v3023_v19 }
 0x652   : > { %3035 = vmatmul.mubr.msk.f32.gmra.mxu1 %vm878_vm4, %v3023_v19  ;;  %2330 = vmatprep.mubr.f32.mxu0 %v3267_v8 }
 0x653   : > { %2419 = vmatprep.mubr.f32.mxu1 %v3267_v8 }
 0x655   : > { %3032 = vmatmul.mubr.msk.f32.gmra.mxu0 %vm878_vm4, %v3024_v21  ;;  %v2240_v39 = vpop.permute.xlu0 %2239 }
 0x656   : > { %3036 = vmatmul.mubr.msk.f32.gmra.mxu1 %vm878_vm4, %v3024_v21  ;;  %2336 = vmatprep.mubr.f32.mxu0 %v3267_v8 }
 0x657   : > { %2425 = vmatprep.mubr.f32.mxu1 %v3267_v8  ;;  %v2235_v44 = vpop.permute.xlu1 %2234 }
 0x659   : > { %3033 = vmatmul.mubr.msk.f32.gmra.mxu0 %vm878_vm4, %v3025_v20  ;;  %v2230_v63 = vpop.permute.xlu0 %2229 }
 0x65a   : > { %3037 = vmatmul.mubr.msk.f32.gmra.mxu1 %vm878_vm4, %v3025_v20  ;;  %2554 = vmatprep.mubr.f32.mxu0 %v3267_v8 }
 0x65b   : > { %2643 = vmatprep.mubr.f32.mxu1 %v3267_v8  ;;  %v2225_v2 = vpop.permute.xlu1 %2224 }
 0x70d   : > { %v2320_v22 = vpop.f32.mrf.mxu0 }
 0x70e   : > { %v2409_v23 = vpop.f32.mrf.mxu1  ;;  %v2321_v11 = vadd.f32 %v2320_v22, %v2225_v2 }
 0x70f   : > { %v2322_v33 = vpop.f32.mrf.mxu0  ;;  %v2410_v32 = vadd.f32 %v2409_v23, %v2225_v2  ;;  %v2450_v23 = vld [vmem:[#allocation5 + $0x48] sm:$0xff] }
 0x710   : > { %v2411_v27 = vpop.f32.mrf.mxu1  ;;  %v2323_v6 = vadd.f32 %v2322_v33, %v2225_v2 }
 0x711   : > { %v2326_v51 = vpop.f32.mrf.mxu0  ;;  %v2412_v12 = vadd.f32 %v2411_v27, %v2225_v2  ;;  %v2449_v27 = vld [vmem:[#allocation5 + $0x40] sm:$0xff] }
 0x712   : > { %v2415_v35 = vpop.f32.mrf.mxu1  ;;  %v2327_v9 = vadd.f32 %v2326_v51, %v2230_v63  ;;  %v2433_v33 = vmax.f32 %v2323_v6, 0.0 }
 0x713   : > { %v2328_v49 = vpop.f32.mrf.mxu0  ;;  %v2416_v10 = vadd.f32 %v2415_v35, %v2230_v63  ;;  %v2435_v22 = vmax.f32 %v2412_v12, 0.0 }
 0x714   : > { %v2417_v28 = vpop.f32.mrf.mxu1  ;;  %v2329_v55 = vadd.f32 %v2328_v49, %v2230_v63  ;;  %v2436_v20 = vmax.f32 %v2327_v9, 0.0  ;;  %v2432_v49 = vmax.f32 %v2321_v11, 0.0 }
 0x715   : > { %v2332_v48 = vpop.f32.mrf.mxu0  ;;  %v2418_v3 = vadd.f32 %v2417_v28, %v2230_v63  ;;  %v2438_v35 = vmax.f32 %v2416_v10, 0.0  ;;  %v2434_v28 = vmax.f32 %v2410_v32, 0.0 }
 0x716   : > { %v2421_v36 = vpop.f32.mrf.mxu1  ;;  %v2333_v40 = vadd.f32 %v2332_v48, %v2235_v44  ;;  %v2437_v19 = vmax.f32 %v2329_v55, 0.0  ;;  %v2451_v48 = vld [vmem:[#allocation5 + $0x50] sm:$0xff] }
 0x717   : > { %v2334_v56 = vpop.f32.mrf.mxu0  ;;  %v2422_v50 = vadd.f32 %v2421_v36, %v2235_v44  ;;  %v2439_v51 = vmax.f32 %v2418_v3, 0.0  ;;  %v2452_v36 = vld [vmem:[#allocation5 + $0x58] sm:$0xff] }
 0x718   : > { %v2423_v31 = vpop.f32.mrf.mxu1  ;;  %v2335_v61 = vadd.f32 %v2334_v56, %v2235_v44  ;;  %v2440_v15 = vmax.f32 %v2333_v40, 0.0 }
 0x719   : > { %v2338_v59 = vpop.f32.mrf.mxu0  ;;  %v2424_v0 = vadd.f32 %v2423_v31, %v2235_v44  ;;  %v2442_v21 = vmax.f32 %v2422_v50, 0.0 }
 0x71a   : > { %v2427_v60 = vpop.f32.mrf.mxu1  ;;  %v2339_v38 = vadd.f32 %v2338_v59, %v2240_v39  ;;  %v2441_v43 = vmax.f32 %v2335_v61, 0.0 }
 0x71b   : > { %v2340_v57 = vpop.f32.mrf.mxu0  ;;  %v2428_v62 = vadd.f32 %v2427_v60, %v2240_v39  ;;  %v2443_v17 = vmax.f32 %v2424_v0, 0.0 }
 0x71c   : > { %v2341_v47 = vadd.f32 %v2340_v57, %v2240_v39  ;;  %v2429_v37 = vpop.f32.mrf.mxu1  ;;  %v2444_v5 = vmax.f32 %v2339_v38, 0.0 }
 0x71d   : > { %v2430_v1 = vadd.f32 %v2429_v37, %v2240_v39  ;;  %v2446_v13 = vmax.f32 %v2428_v62, 0.0  ;;  %v2476_v62 = vpop.permute.xlu0 %2475  ;;  %v2471_v37 = vpop.permute.xlu1 %2470 }
 0x71e   : > { %v2445_v30 = vmax.f32 %v2341_v47, 0.0 }
 0x71f   : > { %v2447_v34 = vmax.f32 %v2430_v1, 0.0 }
 0x720   : > { %2514 = vmatprep.subr.mxu0 %v2445_v30 }
 0x721   : > { %2515 = vmatpush1.msra.mxu0 %v2444_v5  ;;  %2603 = vmatprep.subr.mxu1 %v2447_v34  ;;  %v2466_v3 = vpop.permute.xlu0 %2465  ;;  %v2461_v5 = vpop.permute.xlu1 %2460 }
 0x722   : > { %2516 = vmatprep.subr.mxu0 %v2441_v43  ;;  %2604 = vmatpush1.msra.mxu1 %v2446_v13 }
 0x723   : > { %2517 = vmatpush1.msra.mxu0 %v2440_v15  ;;  %2605 = vmatprep.subr.mxu1 %v2443_v17 }
 0x724   : > { %2518 = vmatprep.subr.mxu0 %v2437_v19  ;;  %2606 = vmatpush1.msra.mxu1 %v2442_v21 }
 0x725   : > { %2519 = vmatpush1.msra.mxu0 %v2436_v20  ;;  %2607 = vmatprep.subr.mxu1 %v2439_v51 }
 0x726   : > { %2520 = vmatprep.subr.mxu0 %v2433_v33  ;;  %2608 = vmatpush1.msra.mxu1 %v2438_v35 }
 0x727   : > { %2521 = vmatpush1.msra.mxu0 %v2432_v49  ;;  %2609 = vmatprep.subr.mxu1 %v2435_v22 }
 0x728   : > { %3042 = vmatmul.mubr.msk.f32.vlgmr.msra.gmra.mxu0 %vm1113_vm5, %v2449_v27  ;;  %2610 = vmatpush1.msra.mxu1 %v2434_v28 }
 0x729   : > { %3046 = vmatmul.mubr.msk.f32.vlgmr.msra.gmra.mxu1 %vm1113_vm5, %v2449_v27  ;;  %2560 = vmatprep.mubr.f32.mxu0 %v3267_v8 }
 0x72a   : > { %2649 = vmatprep.mubr.f32.mxu1 %v3267_v8 }
 0x72c   : > { %3043 = vmatmul.mubr.msk.f32.gmra.mxu0 %vm1113_vm5, %v2450_v23 }
 0x72d   : > { %3047 = vmatmul.mubr.msk.f32.gmra.mxu1 %vm1113_vm5, %v2450_v23  ;;  %2566 = vmatprep.mubr.f32.mxu0 %v3267_v8 }
 0x72e   : > { %2655 = vmatprep.mubr.f32.mxu1 %v3267_v8 }
 0x730   : > { %3044 = vmatmul.mubr.msk.f32.gmra.mxu0 %vm1113_vm5, %v2451_v48 }
 0x731   : > { %3048 = vmatmul.mubr.msk.f32.gmra.mxu1 %vm1113_vm5, %v2451_v48  ;;  %2572 = vmatprep.mubr.f32.mxu0 %v3267_v8 }
 0x732   : > { %2661 = vmatprep.mubr.f32.mxu1 %v3267_v8 }
 0x734   : > { %3045 = vmatmul.mubr.msk.f32.gmra.mxu0 %vm1113_vm5, %v2452_v36 }
 0x735   : > { %3049 = vmatmul.mubr.msk.f32.gmra.mxu1 %vm1113_vm5, %v2452_v36  ;;  %2774 = vmatprep.mubr.f32.mxu0 %v3267_v8 }
 0x736   : > { %2845 = vmatprep.mubr.f32.mxu1 %v3267_v8 }
 0x7e8   : > { %v2556_v39 = vpop.f32.mrf.mxu0 }
 0x7e9   : > { %v2645_v56 = vpop.f32.mrf.mxu1  ;;  %v2557_v43 = vadd.f32 %v2556_v39, %v2461_v5 }
 0x7ea   : > { %v2558_v31 = vpop.f32.mrf.mxu0 }
 0x7eb   : > { %v2647_v44 = vpop.f32.mrf.mxu1  ;;  %v2559_v21 = vadd.f32 %v2558_v31, %v2461_v5 }
 0x7ec   : > { %v2562_v59 = vpop.f32.mrf.mxu0  ;;  %v2648_v35 = vadd.f32 %v2647_v44, %v2461_v5 }
 0x7ed   : > { %v2651_v60 = vpop.f32.mrf.mxu1  ;;  %v2563_v15 = vadd.f32 %v2562_v59, %v2466_v3 }
 0x7ee   : > { %v2564_v38 = vpop.f32.mrf.mxu0  ;;  %v2652_v20 = vadd.f32 %v2651_v60, %v2466_v3 }
 0x7ef   : > { %v2653_v57 = vpop.f32.mrf.mxu1  ;;  %v2565_v13 = vadd.f32 %v2564_v38, %v2466_v3 }
 0x7f0   : > { %v2568_v61 = vpop.f32.mrf.mxu0  ;;  %v2654_v17 = vadd.f32 %v2653_v57, %v2466_v3 }
 0x7f1   : > { %v2657_v47 = vpop.f32.mrf.mxu1  ;;  %v2569_v34 = vadd.f32 %v2568_v61, %v2471_v37 }
 0x7f2   : > { %v2570_v63 = vpop.f32.mrf.mxu0  ;;  %v2658_v11 = vadd.f32 %v2657_v47, %v2471_v37 }
 0x7f3   : > { %v2659_v40 = vpop.f32.mrf.mxu1  ;;  %v2571_v30 = vadd.f32 %v2570_v63, %v2471_v37  ;;  %v2676_v49 = vadd.f32 %v2569_v34, %v4092_v41  ;;  %v2669_v41 = vadd.f32 %v2559_v21, %v4047_v4 }
 0x7f4   : > { %v2574_v0 = vpop.f32.mrf.mxu0  ;;  %v2660_v6 = vadd.f32 %v2659_v40, %v2471_v37 }
 0x7f5   : > { %v2663_v1 = vpop.f32.mrf.mxu1  ;;  %v2575_v55 = vadd.f32 %v2574_v0, %v2476_v62  ;;  %v2677_v51 = vadd.f32 %v2571_v30, %v4097_v18  ;;  %v2672_v18 = vadd.f32 %v2563_v15, %v4067_v58  ;;  %v2700_v58 = vld [vmem:[%s4443_s7] sm:$0xff] }
 0x7f6   : > { %v2576_v50 = vpop.f32.mrf.mxu0  ;;  %v2664_v8 = vadd.f32 %v2663_v1, %v2476_v62  ;;  %v2679_v22 = vadd.f32 %v2660_v6, %v4120_v54  ;;  %v2674_v54 = vadd.f32 %v2652_v20, %v4080_v16 }
 0x7f7   : > { %v2577_v2 = vadd.f32 %v2576_v50, %v2476_v62  ;;  %v2665_v9 = vpop.f32.mrf.mxu1  ;;  %v2680_v32 = vadd.f32 %v2575_v55, %v4123_v53  ;;  %v2673_v53 = vadd.f32 %v2565_v13, %v4072_v25  ;;  %v2668_v25 = vadd.f32 %v2557_v43, %v4044_v14  ;;  %v2705_v14 = vpop.permute.xlu0 %2704 }
 0x7f8   : > { %v2666_v10 = vadd.f32 %v2665_v9, %v2476_v62  ;;  %v2682_v33 = vadd.f32 %v2664_v8, %v4142_v45  ;;  %v2675_v45 = vadd.f32 %v2654_v17, %v4089_v26 }
 0x7f9   : > { %v2681_v12 = vadd.f32 %v2577_v2, %v4128_v46  ;;  %v2646_v46 = vadd.f32 %v2645_v56, %v2461_v5 }
 0x7fa   : > { %v2683_v19 = vadd.f32 %v2666_v10, %v4151_v52  ;;  %v2678_v52 = vadd.f32 %v2658_v11, %v4109_v42  ;;  %v2671_v42 = vadd.f32 %v2648_v35, %v4064_v24 }
 0x7fb   : > { %2734 = vmatprep.subr.mxu0 %v2681_v12  ;;  %v2670_v4 = vadd.f32 %v2646_v46, %v4055_v7 }
 0x7fc   : > { %2735 = vmatpush1.msra.mxu0 %v2680_v32  ;;  %3051 = vmatprep.subr.msk.mxu1 %vm400_vm1, %v2683_v19 }
 0x7fd   : > { %2736 = vmatprep.subr.mxu0 %v2677_v51  ;;  %2806 = vmatpush1.msra.mxu1 %v2682_v33 }
 0x7fe   : > { %2737 = vmatpush1.msra.mxu0 %v2676_v49  ;;  %3052 = vmatprep.subr.msk.mxu1 %vm400_vm1, %v2679_v22 }
 0x7ff   : > { %2738 = vmatprep.subr.mxu0 %v2673_v53  ;;  %2808 = vmatpush1.msra.mxu1 %v2678_v52 }
 0x800   : > { %2739 = vmatpush1.msra.mxu0 %v2672_v18  ;;  %3053 = vmatprep.subr.msk.mxu1 %vm400_vm1, %v2675_v45 }
 0x801   : > { %2740 = vmatprep.subr.mxu0 %v2669_v41  ;;  %2810 = vmatpush1.msra.mxu1 %v2674_v54 }
 0x802   : > { %2741 = vmatpush1.msra.mxu0 %v2668_v25  ;;  %3054 = vmatprep.subr.msk.mxu1 %vm400_vm1, %v2671_v42 }
 0x803   : > { %3050 = vmatmul.mubr.msk.f32.vlgmr.msra.gmra.mxu0 %vm1113_vm5, %v2700_v58  ;;  %2812 = vmatpush1.msra.mxu1 %v2670_v4 }
 0x804   : > { %3055 = vmatmul.mubr.msk.f32.vlgmr.msra.gmra.mxu1 %vm1113_vm5, %v2700_v58 }
 0x8c3   : > { %v2776_v24 = vpop.f32.mrf.mxu0 }
 0x8c4   : > { %v2777_v16 = vadd.f32 %v2776_v24, %v2705_v14  ;;  %v2847_v7 = vpop.f32.mrf.mxu1 }
 0x8c5   : > { %v2848_v26 = vadd.f32 %v2847_v7, %v2705_v14  ;;  %v2778_v27 = vpop.f32.mrf.mxu0 }
 0x8c6   : > { %2852 = vst [vmem:[%s3409_s23] sm:$0xff] %v2777_v16  ;;  %v2779_v29 = vadd.f32 %v2778_v27, %v2705_v14  ;;  %v2849_v28 = vpop.f32.mrf.mxu1 }
 0x8c7   : > { %2854 = vst [vmem:[%s3409_s23 + $0x10] sm:$0xff] %v2848_v26  ;;  %v2850_v23 = vadd.f32 %v2849_v28, %v2705_v14 }
 0x8c8   : > { %2853 = vst [vmem:[%s3409_s23 + $0x8] sm:$0xff] %v2779_v29 }
 0x8c9   : > { %2855 = vst [vmem:[%s3409_s23 + $0x18] sm:$0xff] %v2850_v23 }
 0x8ca   : > { %3193 = shalt.err (!%p3190_p2)
}
 0x8cb   : > { %s3194_s23 = scalar_lea.hbm %s4392_s28, 512  ;;  %s3198_s27 = scalar_lea.hbm %s4445_s9, 1024 }
 0x8cc   : > { %p3195_p3 = scmp.ne.s32.totalorder %s4392_s28, %s3194_s23  ;;  %p3199_p7 = scmp.lt.s32.totalorder %s4392_s28, %s4445_s9 }
 0x8cd   : > { %p3200_p9 = scmp.lt.s32.totalorder %s3198_s27, %s3194_s23 }
 0x8ce   : > { %p3196_p5 = pnand %p3195_p3, %p3366_p4 }
 0x8cf   : > { %p3201_p10 = por %p3200_p9, %p3199_p7 }
 0x8d0   : > { %p3197_p6 = pneg %p3196_p5 }
 0x8d2   : > { %p3202_p11 = pnand %p3201_p10, %p3197_p6 }
 0x8d4   : > { %3205 = shalt.err (!%p3202_p11)
}
 0x8d5   : > { %3080 = dma.vmem_to_hbm [thread:$0]  (%p3366_p4), %s2874_s17, 512, %s4392_s28, %s2857_s29  }
 0x8d6 PF: > { %p3092_p12 = scmp.ge.s32.totalorder %s3262_s14, 2  ;;  %s2885_s12 = sand.u32 1, %s3242_s30  }
 0x8d7   : > { %s2886_s15 = scalar_lea.sflag [#allocation7], %s2885_s12 }
 0x8d8   : > { %p3087_p13 = pnand %p3092_p12, %p3373_p8 }
 0x8da   : > { %p3088_p0 = pneg %p3087_p13 }
 0x8dc   : > { %3237 = dma.done.wait (%p3088_p0), %s2886_s15, 512  }
 0x8dd   : > { %3239 = vsyncadd (%p3088_p0), %s2886_s15, 4294966784  ;;  %s23_s14 = sadd.s32 1, %s3262_s14   ;;  %s4452_s19 = sld [smem:[#allocation13_spill]] }
 0x8de   : > { %p20_p1 = scmp.ge.s32.totalorder %s23_s14, 4   ;;  %s4453_s30 = smov %s3246_s10 }
 0x8df   : > { %s4454_s10 = smov %s3250_s11  ;;  %s4455_s11 = smov %s3379_s22 }
 0x8e0   : > { %s4456_s12 = smov %s3258_s13  ;;  %22 = sbr.rel (!%p20_p1) target bundleno = 5 (0x5), region = 140 }
 0x8e3   : > { %s4457_s13 = smov %s4452_s19 }
 0x8e5   :  { %2891 = vsyncpa [#allocation6], 1 }
 0x8e6   :  { %2893 = vsyncpa [#allocation6 + $0x1], 1 }
 0x8e7   :  { %2894 = vsyncpa [#allocation7], 1 }
 0x8e8   :  { %2896 = vsyncpa [#allocation7 + $0x1], 1 }
 0x8e9   :  { %2897 = vsyncmov [#allocation4] }
 0x8ec   :  { %s2898_s21 = vpop.sfrf %2897 }
 0x8ed   :  { %p3061_p4 = scmp.ne.s32.totalorder %s2898_s21, 0 }
 0x8ef   :  { %2902 = shalt.err (%p3061_p4)  }

</bundles_post_ra>
